<compile_context>
chip_gen: v5e
topology: v5e:2x2
jax: 0.10.0
libtpu: 0.0.40
codegen_flags: <defaults>
</compile_context>

<pallas_src>
import jax
import jax.numpy as jnp
from jax import lax
from jax.experimental import pallas as pl
from jax.experimental.pallas import tpu as pltpu


# ----------------------------------------------------------------------------
# Tiling helper: largest power-of-two-scaled tile <= preferred that divides dim
# (respecting the (8, 128) alignment), else the full dim.
# ----------------------------------------------------------------------------
def _pick_tile(dim, preferred, align):
    t = preferred
    while t >= align:
        if dim % t == 0:
            return t
        t //= 2
    return dim


# ----------------------------------------------------------------------------
# Tiled fused linear: out = x @ W + b        (project, vocab linear, gate precompute)
# Tiled matmul (no bias): out = x @ W        (time-invariant image gates)
# ----------------------------------------------------------------------------
def _linear_kernel(x_ref, w_ref, b_ref, o_ref):
    o_ref[...] = (
        jnp.dot(x_ref[...], w_ref[...], preferred_element_type=jnp.float32)
        + b_ref[...]
    ).astype(o_ref.dtype)


def _matmul_kernel(x_ref, w_ref, o_ref):
    o_ref[...] = jnp.dot(
        x_ref[...], w_ref[...], preferred_element_type=jnp.float32
    ).astype(o_ref.dtype)


def pallas_linear(x2d, w_t, b_row, *, tm_pref=256, tn_pref=512):
    """x2d: (M, K) f32, w_t: (K, N) f32, b_row: (1, N) f32 -> (M, N) f32."""
    M, K = x2d.shape
    K2, N = w_t.shape
    assert K == K2
    tm = _pick_tile(M, tm_pref, 8)
    tn = _pick_tile(N, tn_pref, 128)
    return pl.pallas_call(
        _linear_kernel,
        out_shape=jax.ShapeDtypeStruct((M, N), jnp.float32),
        grid=(M // tm, N // tn),
        in_specs=[
            pl.BlockSpec((tm, K), lambda i, j: (i, 0)),
            pl.BlockSpec((K, tn), lambda i, j: (0, j)),
            pl.BlockSpec((1, tn), lambda i, j: (0, j)),
        ],
        out_specs=pl.BlockSpec((tm, tn), lambda i, j: (i, j)),
        compiler_params=pltpu.CompilerParams(
            dimension_semantics=("parallel", "parallel")),
    )(x2d, w_t, b_row)


def pallas_matmul(x2d, w_t, *, tm_pref=256, tn_pref=512):
    """x2d: (M, K) f32, w_t: (K, N) f32 -> (M, N) f32 (no bias)."""
    M, K = x2d.shape
    K2, N = w_t.shape
    assert K == K2
    tm = _pick_tile(M, tm_pref, 8)
    tn = _pick_tile(N, tn_pref, 128)
    return pl.pallas_call(
        _matmul_kernel,
        out_shape=jax.ShapeDtypeStruct((M, N), jnp.float32),
        grid=(M // tm, N // tn),
        in_specs=[
            pl.BlockSpec((tm, K), lambda i, j: (i, 0)),
            pl.BlockSpec((K, tn), lambda i, j: (0, j)),
        ],
        out_specs=pl.BlockSpec((tm, tn), lambda i, j: (i, j)),
        compiler_params=pltpu.CompilerParams(
            dimension_semantics=("parallel", "parallel")),
    )(x2d, w_t)


# ----------------------------------------------------------------------------
# Single-layer LSTM recurrence over PRE-COMPUTED input gates.
#   gates_t = gx[t] + img_gates + h_{t-1} @ W_hh       (PyTorch gate order i,f,g,o)
# Single grid step, in-kernel fori_loop; h/c stay in vregs across steps.
# ----------------------------------------------------------------------------
def _lstm_kernel(gx_ref, ig_ref, whh_ref, h0_ref, c0_ref,
                 hid_ref, hT_ref, cT_ref):
    Tm1 = gx_ref.shape[0]
    H = h0_ref.shape[-1]
    ig = ig_ref[...]                      # (B, 4H) time-invariant image gates
    whh = whh_ref[...]                    # (H, 4H)

    def step(t, carry):
        h, c = carry
        gates = gx_ref[t] + ig + jnp.dot(h, whh,
                                         preferred_element_type=jnp.float32)
        # NOTE: gate slices are lane-aligned (free) when H % 128 == 0.
        i_g = jax.nn.sigmoid(gates[:, 0:H])
        f_g = jax.nn.sigmoid(gates[:, H:2 * H])
        g_g = jnp.tanh(gates[:, 2 * H:3 * H])
        o_g = jax.nn.sigmoid(gates[:, 3 * H:4 * H])
        c_new = f_g * c + i_g * g_g
        h_new = o_g * jnp.tanh(c_new)
        hid_ref[t] = h_new                # (B, H) slab for time step t
        return h_new, c_new

    h_fin, c_fin = lax.fori_loop(
        0, Tm1, step, (h0_ref[...], c0_ref[...]), unroll=(Tm1 <= 16))

    # Final state written once (not every step).
    hT_ref[...] = h_fin
    cT_ref[...] = c_fin


def pallas_lstm(gates_x_tm, img_gates, w_hh_t, h0, c0):
    """gates_x_tm: (T-1, B, 4H) time-major precomputed input gates (+bias);
    img_gates: (B, 4H); returns (hiddens_tm (T-1,B,H), h_T (B,H), c_T (B,H))."""
    Tm1, B, G = gates_x_tm.shape
    H = h0.shape[-1]
    return pl.pallas_call(
        _lstm_kernel,
        out_shape=(
            jax.ShapeDtypeStruct((Tm1, B, H), jnp.float32),
            jax.ShapeDtypeStruct((B, H), jnp.float32),
            jax.ShapeDtypeStruct((B, H), jnp.float32),
        ),
        grid=(1,),
        in_specs=[
            pl.BlockSpec((Tm1, B, G), lambda i: (0, 0, 0)),
            pl.BlockSpec((B, G), lambda i: (0, 0)),
            pl.BlockSpec((H, G), lambda i: (0, 0)),
            pl.BlockSpec((B, H), lambda i: (0, 0)),
            pl.BlockSpec((B, H), lambda i: (0, 0)),
        ],
        out_specs=(
            pl.BlockSpec((Tm1, B, H), lambda i: (0, 0, 0)),
            pl.BlockSpec((B, H), lambda i: (0, 0)),
            pl.BlockSpec((B, H), lambda i: (0, 0)),
        ),
        compiler_params=pltpu.CompilerParams(
            dimension_semantics=("arbitrary",)),  # sequential recurrence
    )(gates_x_tm, img_gates, w_hh_t, h0, c0)


# ----------------------------------------------------------------------------
# DecoderRNN forward
# ----------------------------------------------------------------------------
def decoder_forward(params, features, captions, prev_hidden):
    """features: (B, 2, 2048) f32; captions: (B, T) i32; prev_hidden: ((1,B,H),(1,B,H))."""
    B = features.shape[0]
    T = captions.shape[1]
    Vz = params["b_proj"].shape[-1]
    H = params["w_hh_t"].shape[0]
    E = params["embed"].shape[-1]

    # self.project(features) -> (B*2, Vz); the torch cat of image_emb[:,0,:] and
    # image_emb[:,1,:] is just a contiguous reshape to (B, 2*Vz).
    img_2d = pallas_linear(
        features.reshape(B * 2, 2048), params["w_proj_t"], params["b_proj"]
    ).reshape(B, 2 * Vz)

    # Time-invariant image contribution to the LSTM gates — computed ONCE.
    img_gates = pallas_matmul(img_2d, params["w_ih_img_t"])          # (B, 4H)

    # Token-embedding contribution for steps 0..T-2, time-major, folded into one
    # large matmul with M = (T-1)*B (fused LSTM bias added here).
    embeddings = jnp.take(params["embed"], captions[:, :-1], axis=0)  # (B, T-1, E)
    emb_tm = jnp.transpose(embeddings, (1, 0, 2)).reshape((T - 1) * B, E)
    gates_x = pallas_linear(emb_tm, params["w_ih_emb_t"], params["b_lstm"])
    gates_x = gates_x.reshape(T - 1, B, 4 * H)

    # LSTM recurrence (only h @ W_hh per step inside the kernel).
    h0, c0 = prev_hidden                                              # each (1, B, H)
    hiddens_tm, hT, cT = pallas_lstm(gates_x, img_gates,
                                     params["w_hh_t"], h0[0], c0[0])
    hiddens = jnp.transpose(hiddens_tm, (1, 0, 2))                    # (B, T-1, H)

    # self.linear(hiddens) -> (B, T-1, vocab)  (T folded into M, lane-dense tn)
    V = params["b_lin"].shape[-1]
    outputs = pallas_linear(
        hiddens.reshape(B * (T - 1), H), params["w_lin_t"], params["b_lin"]
    ).reshape(B, T - 1, V)

    return outputs, (hT[None], cT[None])


# TODO(synk): `sample()` (autoregressive decoding with categorical/greedy/top-k sampling)
# is host-side control flow around forward(); only forward() is implemented as kernels.


def init_params(key, embed_size, hidden_size, vocab_size, visual_embed_size):
    ks = jax.random.split(key, 8)
    D_in = embed_size + 2 * visual_embed_size
    k_lstm = 1.0 / jnp.sqrt(jnp.float32(hidden_size))
    k_proj = 1.0 / jnp.sqrt(2048.0)
    # nn.LSTM weight_ih stored transposed as (D_in, 4H), gate order i,f,g,o;
    # split into image rows [:2Vz] and embedding rows [2Vz:] for the hoisted matmuls.
    w_ih_t = jax.random.uniform(ks[1], (D_in, 4 * hidden_size),
                                jnp.float32, -k_lstm, k_lstm)
    return {
        # nn.Embedding weight, uniform(-0.1, 0.1)
        "embed": jax.random.uniform(ks[0], (vocab_size, embed_size),
                                    jnp.float32, -0.1, 0.1),
        "w_ih_img_t": w_ih_t[:2 * visual_embed_size],
        "w_ih_emb_t": w_ih_t[2 * visual_embed_size:],
        "w_hh_t": jax.random.uniform(ks[2], (hidden_size, 4 * hidden_size),
                                     jnp.float32, -k_lstm, k_lstm),
        # b_ih + b_hh fused
        "b_lstm": (jax.random.uniform(ks[3], (1, 4 * hidden_size),
                                      jnp.float32, -k_lstm, k_lstm)
                   + jax.random.uniform(ks[4], (1, 4 * hidden_size),
                                        jnp.float32, -k_lstm, k_lstm)),
        # nn.Linear(hidden, vocab): weight uniform(-0.1, 0.1), bias 0
        "w_lin_t": jax.random.uniform(ks[5], (hidden_size, vocab_size),
                                      jnp.float32, -0.1, 0.1),
        "b_lin": jnp.zeros((1, vocab_size), jnp.float32),
        # nn.Linear(2048, visual_embed_size) default init
        "w_proj_t": jax.random.uniform(ks[6], (2048, visual_embed_size),
                                       jnp.float32, -k_proj, k_proj),
        "b_proj": jax.random.uniform(ks[7], (1, visual_embed_size),
                                     jnp.float32, -k_proj, k_proj),
    }


if __name__ == "__main__":
    # B >= 8 fills vreg sublanes; vocab = 128 keeps the vocab linear lane-dense.
    B, T = 8, 8
    embed_size, hidden_size, vocab_size, visual_embed_size = 16, 32, 128, 8

    key = jax.random.PRNGKey(0)
    kp, kf, kc, kh, kcs = jax.random.split(key, 5)

    params = init_params(kp, embed_size, hidden_size, vocab_size, visual_embed_size)

    features = jax.random.normal(kf, (B, 2, 2048), jnp.float32)
    captions = jax.random.randint(kc, (B, T), 0, vocab_size, jnp.int32)
    prev_hidden = (jax.random.normal(kh, (1, B, hidden_size), jnp.float32),
                   jax.random.normal(kcs, (1, B, hidden_size), jnp.float32))

    fwd = jax.jit(decoder_forward)
    outputs, (h_n, c_n) = fwd(params, features, captions, prev_hidden)
    jax.block_until_ready((outputs, h_n, c_n))

    assert outputs.shape == (B, T - 1, vocab_size)
    assert h_n.shape == (1, B, hidden_size) and c_n.shape == (1, B, hidden_size)
    assert jnp.all(jnp.isfinite(outputs)) and jnp.all(jnp.isfinite(h_n))
    assert jnp.all(jnp.isfinite(c_n))
    print("KERNEL_OK")
</pallas_src>

<mosaic_0001>
module attributes {stable_mosaic.version = 11 : i64} {
  func.func @_linear_kernel(%arg0: i32, %arg1: i32, %arg2: memref<16x2048xf32, #tpu.memory_space<vmem>>, %arg3: memref<2048x8xf32, #tpu.memory_space<vmem>>, %arg4: memref<1x8xf32, #tpu.memory_space<vmem>>, %arg5: memref<16x8xf32, #tpu.memory_space<vmem>>) attributes {dimension_semantics = [#tpu.dimension_semantics<parallel>, #tpu.dimension_semantics<parallel>], iteration_bounds = array<i64: 1, 1>, scalar_prefetch = 0 : i64, scratch_operands = 0 : i64, tpu.core_type = #tpu.core_type<tc>, window_params = [{transform_indices = @transform_0, window_bounds = array<i64: 16, 2048>}, {transform_indices = @transform_1, window_bounds = array<i64: 2048, 8>}, {transform_indices = @transform_2, window_bounds = array<i64: 1, 8>}, {transform_indices = @transform_3, window_bounds = array<i64: 16, 8>}]} {
    %c0 = arith.constant 0 : index
    %c0_0 = arith.constant 0 : index
    %0 = vector.load %arg2[%c0, %c0_0] : memref<16x2048xf32, #tpu.memory_space<vmem>>, vector<16x2048xf32>
    %c0_1 = arith.constant 0 : index
    %c0_2 = arith.constant 0 : index
    %1 = vector.load %arg3[%c0_1, %c0_2] : memref<2048x8xf32, #tpu.memory_space<vmem>>, vector<2048x8xf32>
    %cst = arith.constant dense<0.000000e+00> : vector<16x8xf32>
    %2 = tpu.matmul %0, %1, %cst {dimension_numbers = #tpu.dot_dimension_numbers<[1], [0], [0], [1], [0, 0, 1, 1], [], []>} : vector<16x2048xf32>, vector<2048x8xf32>, vector<16x8xf32> -> vector<16x8xf32>
    %c0_3 = arith.constant 0 : index
    %c0_4 = arith.constant 0 : index
    %3 = vector.load %arg4[%c0_3, %c0_4] : memref<1x8xf32, #tpu.memory_space<vmem>>, vector<1x8xf32>
    %4 = vector.broadcast %3 : vector<1x8xf32> to vector<16x8xf32>
    %5 = arith.addf %2, %4 : vector<16x8xf32>
    %c0_5 = arith.constant 0 : index
    %c0_6 = arith.constant 0 : index
    %6 = vector.load %arg5[%c0_5, %c0_6] : memref<16x8xf32, #tpu.memory_space<vmem>>, vector<16x8xf32>
    tpu.vector_store %arg5[%c0_5, %c0_6], %5 {strides = array<i32>} : memref<16x8xf32, #tpu.memory_space<vmem>>, vector<16x8xf32>,
    return
  }
  func.func @transform_0(%arg0: i32, %arg1: i32) -> (i32, i32) {
    %c0_i32 = arith.constant 0 : i32
    %c0_i32_0 = arith.constant 0 : i32
    return %arg0, %c0_i32 : i32, i32
  }
  func.func @transform_1(%arg0: i32, %arg1: i32) -> (i32, i32) {
    %c0_i32 = arith.constant 0 : i32
    %c0_i32_0 = arith.constant 0 : i32
    return %c0_i32, %arg1 : i32, i32
  }
  func.func @transform_2(%arg0: i32, %arg1: i32) -> (i32, i32) {
    %c0_i32 = arith.constant 0 : i32
    %c0_i32_0 = arith.constant 0 : i32
    return %c0_i32, %arg1 : i32, i32
  }
  func.func @transform_3(%arg0: i32, %arg1: i32) -> (i32, i32) {
    %c0_i32 = arith.constant 0 : i32
    return %arg0, %arg1 : i32, i32
  }
}

module attributes {stable_mosaic.version = 11 : i64} {
  func.func @_matmul_kernel(%arg0: i32, %arg1: i32, %arg2: memref<8x16xf32, #tpu.memory_space<vmem>>, %arg3: memref<16x128xf32, #tpu.memory_space<vmem>>, %arg4: memref<8x128xf32, #tpu.memory_space<vmem>>) attributes {dimension_semantics = [#tpu.dimension_semantics<parallel>, #tpu.dimension_semantics<parallel>], iteration_bounds = array<i64: 1, 1>, scalar_prefetch = 0 : i64, scratch_operands = 0 : i64, tpu.core_type = #tpu.core_type<tc>, window_params = [{transform_indices = @transform_0, window_bounds = array<i64: 8, 16>}, {transform_indices = @transform_1, window_bounds = array<i64: 16, 128>}, {transform_indices = @transform_2, window_bounds = array<i64: 8, 128>}]} {
    %c0 = arith.constant 0 : index
    %c0_0 = arith.constant 0 : index
    %0 = vector.load %arg2[%c0, %c0_0] : memref<8x16xf32, #tpu.memory_space<vmem>>, vector<8x16xf32>
    %c0_1 = arith.constant 0 : index
    %c0_2 = arith.constant 0 : index
    %1 = vector.load %arg3[%c0_1, %c0_2] : memref<16x128xf32, #tpu.memory_space<vmem>>, vector<16x128xf32>
    %cst = arith.constant dense<0.000000e+00> : vector<8x128xf32>
    %2 = tpu.matmul %0, %1, %cst {dimension_numbers = #tpu.dot_dimension_numbers<[1], [0], [0], [1], [0, 0, 1, 1], [], []>} : vector<8x16xf32>, vector<16x128xf32>, vector<8x128xf32> -> vector<8x128xf32>
    %c0_3 = arith.constant 0 : index
    %c0_4 = arith.constant 0 : index
    %3 = vector.load %arg4[%c0_3, %c0_4] : memref<8x128xf32, #tpu.memory_space<vmem>>, vector<8x128xf32>
    tpu.vector_store %arg4[%c0_3, %c0_4], %2 {strides = array<i32>} : memref<8x128xf32, #tpu.memory_space<vmem>>, vector<8x128xf32>,
    return
  }
  func.func @transform_0(%arg0: i32, %arg1: i32) -> (i32, i32) {
    %c0_i32 = arith.constant 0 : i32
    %c0_i32_0 = arith.constant 0 : i32
    return %arg0, %c0_i32 : i32, i32
  }
  func.func @transform_1(%arg0: i32, %arg1: i32) -> (i32, i32) {
    %c0_i32 = arith.constant 0 : i32
    %c0_i32_0 = arith.constant 0 : i32
    return %c0_i32, %arg1 : i32, i32
  }
  func.func @transform_2(%arg0: i32, %arg1: i32) -> (i32, i32) {
    %c0_i32 = arith.constant 0 : i32
    return %arg0, %arg1 : i32, i32
  }
}

module attributes {stable_mosaic.version = 11 : i64} {
  func.func @_linear_kernel(%arg0: i32, %arg1: i32, %arg2: memref<8x32xf32, #tpu.memory_space<vmem>>, %arg3: memref<32x128xf32, #tpu.memory_space<vmem>>, %arg4: memref<1x128xf32, #tpu.memory_space<vmem>>, %arg5: memref<8x128xf32, #tpu.memory_space<vmem>>) attributes {dimension_semantics = [#tpu.dimension_semantics<parallel>, #tpu.dimension_semantics<parallel>], iteration_bounds = array<i64: 7, 1>, scalar_prefetch = 0 : i64, scratch_operands = 0 : i64, tpu.core_type = #tpu.core_type<tc>, window_params = [{transform_indices = @transform_0, window_bounds = array<i64: 8, 32>}, {transform_indices = @transform_1, window_bounds = array<i64: 32, 128>}, {transform_indices = @transform_2, window_bounds = array<i64: 1, 128>}, {transform_indices = @transform_3, window_bounds = array<i64: 8, 128>}]} {
    %c0 = arith.constant 0 : index
    %c0_0 = arith.constant 0 : index
    %0 = vector.load %arg2[%c0, %c0_0] : memref<8x32xf32, #tpu.memory_space<vmem>>, vector<8x32xf32>
    %c0_1 = arith.constant 0 : index
    %c0_2 = arith.constant 0 : index
    %1 = vector.load %arg3[%c0_1, %c0_2] : memref<32x128xf32, #tpu.memory_space<vmem>>, vector<32x128xf32>
    %cst = arith.constant dense<0.000000e+00> : vector<8x128xf32>
    %2 = tpu.matmul %0, %1, %cst {dimension_numbers = #tpu.dot_dimension_numbers<[1], [0], [0], [1], [0, 0, 1, 1], [], []>} : vector<8x32xf32>, vector<32x128xf32>, vector<8x128xf32> -> vector<8x128xf32>
    %c0_3 = arith.constant 0 : index
    %c0_4 = arith.constant 0 : index
    %3 = vector.load %arg4[%c0_3, %c0_4] : memref<1x128xf32, #tpu.memory_space<vmem>>, vector<1x128xf32>
    %4 = vector.broadcast %3 : vector<1x128xf32> to vector<8x128xf32>
    %5 = arith.addf %2, %4 : vector<8x128xf32>
    %c0_5 = arith.constant 0 : index
    %c0_6 = arith.constant 0 : index
    %6 = vector.load %arg5[%c0_5, %c0_6] : memref<8x128xf32, #tpu.memory_space<vmem>>, vector<8x128xf32>
    tpu.vector_store %arg5[%c0_5, %c0_6], %5 {strides = array<i32>} : memref<8x128xf32, #tpu.memory_space<vmem>>, vector<8x128xf32>,
    return
  }
  func.func @transform_0(%arg0: i32, %arg1: i32) -> (i32, i32) {
    %c0_i32 = arith.constant 0 : i32
    %c0_i32_0 = arith.constant 0 : i32
    return %arg0, %c0_i32 : i32, i32
  }
  func.func @transform_1(%arg0: i32, %arg1: i32) -> (i32, i32) {
    %c0_i32 = arith.constant 0 : i32
    %c0_i32_0 = arith.constant 0 : i32
    return %c0_i32, %arg1 : i32, i32
  }
  func.func @transform_2(%arg0: i32, %arg1: i32) -> (i32, i32) {
    %c0_i32 = arith.constant 0 : i32
    %c0_i32_0 = arith.constant 0 : i32
    return %c0_i32, %arg1 : i32, i32
  }
  func.func @transform_3(%arg0: i32, %arg1: i32) -> (i32, i32) {
    %c0_i32 = arith.constant 0 : i32
    return %arg0, %arg1 : i32, i32
  }
}

module attributes {stable_mosaic.version = 11 : i64} {
  func.func @_linear_kernel(%arg0: i32, %arg1: i32, %arg2: memref<8x16xf32, #tpu.memory_space<vmem>>, %arg3: memref<16x128xf32, #tpu.memory_space<vmem>>, %arg4: memref<1x128xf32, #tpu.memory_space<vmem>>, %arg5: memref<8x128xf32, #tpu.memory_space<vmem>>) attributes {dimension_semantics = [#tpu.dimension_semantics<parallel>, #tpu.dimension_semantics<parallel>], iteration_bounds = array<i64: 7, 1>, scalar_prefetch = 0 : i64, scratch_operands = 0 : i64, tpu.core_type = #tpu.core_type<tc>, window_params = [{transform_indices = @transform_0, window_bounds = array<i64: 8, 16>}, {transform_indices = @transform_1, window_bounds = array<i64: 16, 128>}, {transform_indices = @transform_2, window_bounds = array<i64: 1, 128>}, {transform_indices = @transform_3, window_bounds = array<i64: 8, 128>}]} {
    %c0 = arith.constant 0 : index
    %c0_0 = arith.constant 0 : index
    %0 = vector.load %arg2[%c0, %c0_0] : memref<8x16xf32, #tpu.memory_space<vmem>>, vector<8x16xf32>
    %c0_1 = arith.constant 0 : index
    %c0_2 = arith.constant 0 : index
    %1 = vector.load %arg3[%c0_1, %c0_2] : memref<16x128xf32, #tpu.memory_space<vmem>>, vector<16x128xf32>
    %cst = arith.constant dense<0.000000e+00> : vector<8x128xf32>
    %2 = tpu.matmul %0, %1, %cst {dimension_numbers = #tpu.dot_dimension_numbers<[1], [0], [0], [1], [0, 0, 1, 1], [], []>} : vector<8x16xf32>, vector<16x128xf32>, vector<8x128xf32> -> vector<8x128xf32>
    %c0_3 = arith.constant 0 : index
    %c0_4 = arith.constant 0 : index
    %3 = vector.load %arg4[%c0_3, %c0_4] : memref<1x128xf32, #tpu.memory_space<vmem>>, vector<1x128xf32>
    %4 = vector.broadcast %3 : vector<1x128xf32> to vector<8x128xf32>
    %5 = arith.addf %2, %4 : vector<8x128xf32>
    %c0_5 = arith.constant 0 : index
    %c0_6 = arith.constant 0 : index
    %6 = vector.load %arg5[%c0_5, %c0_6] : memref<8x128xf32, #tpu.memory_space<vmem>>, vector<8x128xf32>
    tpu.vector_store %arg5[%c0_5, %c0_6], %5 {strides = array<i32>} : memref<8x128xf32, #tpu.memory_space<vmem>>, vector<8x128xf32>,
    return
  }
  func.func @transform_0(%arg0: i32, %arg1: i32) -> (i32, i32) {
    %c0_i32 = arith.constant 0 : i32
    %c0_i32_0 = arith.constant 0 : i32
    return %arg0, %c0_i32 : i32, i32
  }
  func.func @transform_1(%arg0: i32, %arg1: i32) -> (i32, i32) {
    %c0_i32 = arith.constant 0 : i32
    %c0_i32_0 = arith.constant 0 : i32
    return %c0_i32, %arg1 : i32, i32
  }
  func.func @transform_2(%arg0: i32, %arg1: i32) -> (i32, i32) {
    %c0_i32 = arith.constant 0 : i32
    %c0_i32_0 = arith.constant 0 : i32
    return %c0_i32, %arg1 : i32, i32
  }
  func.func @transform_3(%arg0: i32, %arg1: i32) -> (i32, i32) {
    %c0_i32 = arith.constant 0 : i32
    return %arg0, %arg1 : i32, i32
  }
}

module attributes {stable_mosaic.version = 11 : i64} {
  func.func @_lstm_kernel(%arg0: i32, %arg1: memref<7x8x128xf32, #tpu.memory_space<vmem>>, %arg2: memref<8x128xf32, #tpu.memory_space<vmem>>, %arg3: memref<32x128xf32, #tpu.memory_space<vmem>>, %arg4: memref<8x32xf32, #tpu.memory_space<vmem>>, %arg5: memref<8x32xf32, #tpu.memory_space<vmem>>, %arg6: memref<7x8x32xf32, #tpu.memory_space<vmem>>, %arg7: memref<8x32xf32, #tpu.memory_space<vmem>>, %arg8: memref<8x32xf32, #tpu.memory_space<vmem>>) attributes {dimension_semantics = [#tpu.dimension_semantics<arbitrary>], iteration_bounds = array<i64: 1>, scalar_prefetch = 0 : i64, scratch_operands = 0 : i64, tpu.core_type = #tpu.core_type<tc>, window_params = [{pipeline_mode = #tpu.pipeline_mode<synchronous>, transform_indices = @transform_0, window_bounds = array<i64: 7, 8, 128>}, {pipeline_mode = #tpu.pipeline_mode<synchronous>, transform_indices = @transform_1, window_bounds = array<i64: 8, 128>}, {pipeline_mode = #tpu.pipeline_mode<synchronous>, transform_indices = @transform_2, window_bounds = array<i64: 32, 128>}, {pipeline_mode = #tpu.pipeline_mode<synchronous>, transform_indices = @transform_3, window_bounds = array<i64: 8, 32>}, {pipeline_mode = #tpu.pipeline_mode<synchronous>, transform_indices = @transform_4, window_bounds = array<i64: 8, 32>}, {pipeline_mode = #tpu.pipeline_mode<synchronous>, transform_indices = @transform_5, window_bounds = array<i64: 7, 8, 32>}, {pipeline_mode = #tpu.pipeline_mode<synchronous>, transform_indices = @transform_6, window_bounds = array<i64: 8, 32>}, {pipeline_mode = #tpu.pipeline_mode<synchronous>, transform_indices = @transform_7, window_bounds = array<i64: 8, 32>}]} {
    %c0 = arith.constant 0 : index
    %c0_0 = arith.constant 0 : index
    %0 = vector.load %arg2[%c0, %c0_0] : memref<8x128xf32, #tpu.memory_space<vmem>>, vector<8x128xf32>
    %c0_1 = arith.constant 0 : index
    %c0_2 = arith.constant 0 : index
    %1 = vector.load %arg3[%c0_1, %c0_2] : memref<32x128xf32, #tpu.memory_space<vmem>>, vector<32x128xf32>
    %c0_3 = arith.constant 0 : index
    %c0_4 = arith.constant 0 : index
    %2 = vector.load %arg4[%c0_3, %c0_4] : memref<8x32xf32, #tpu.memory_space<vmem>>, vector<8x32xf32>
    %c0_5 = arith.constant 0 : index
    %c0_6 = arith.constant 0 : index
    %3 = vector.load %arg5[%c0_5, %c0_6] : memref<8x32xf32, #tpu.memory_space<vmem>>, vector<8x32xf32>
    %c0_i32 = arith.constant 0 : i32
    %4 = arith.index_cast %c0_i32 : i32 to index
    %c0_7 = arith.constant 0 : index
    %c0_8 = arith.constant 0 : index
    %5 = vector.load %arg1[%4, %c0_7, %c0_8] : memref<7x8x128xf32, #tpu.memory_space<vmem>>, vector<1x8x128xf32>
    %6 = vector.shape_cast %5 : vector<1x8x128xf32> to vector<8x128xf32>
    %7 = arith.addf %6, %0 : vector<8x128xf32>
    %cst = arith.constant dense<0.000000e+00> : vector<8x128xf32>
    %8 = tpu.matmul %2, %1, %cst {dimension_numbers = #tpu.dot_dimension_numbers<[1], [0], [0], [1], [0, 0, 1, 1], [], []>} : vector<8x32xf32>, vector<32x128xf32>, vector<8x128xf32> -> vector<8x128xf32>
    %9 = arith.addf %7, %8 : vector<8x128xf32>
    %10 = vector.extract_strided_slice %9 {offsets = [0, 0], sizes = [8, 32], strides = [1, 1]} : vector<8x128xf32> to vector<8x32xf32>
    %11 = arith.negf %10 : vector<8x32xf32>
    %12 = math.exp %11 : vector<8x32xf32>
    %cst_9 = arith.constant 1.000000e+00 : f32
    %13 = vector.broadcast %cst_9 : f32 to vector<8x32xf32>
    %14 = arith.addf %13, %12 : vector<8x32xf32>
    %15 = arith.divf %13, %14 : vector<8x32xf32>
    %16 = vector.extract_strided_slice %9 {offsets = [0, 32], sizes = [8, 32], strides = [1, 1]} : vector<8x128xf32> to vector<8x32xf32>
    %17 = arith.negf %16 : vector<8x32xf32>
    %18 = math.exp %17 : vector<8x32xf32>
    %cst_10 = arith.constant 1.000000e+00 : f32
    %19 = vector.broadcast %cst_10 : f32 to vector<8x32xf32>
    %20 = arith.addf %19, %18 : vector<8x32xf32>
    %21 = arith.divf %19, %20 : vector<8x32xf32>
    %22 = vector.extract_strided_slice %9 {offsets = [0, 64], sizes = [8, 32], strides = [1, 1]} : vector<8x128xf32> to vector<8x32xf32>
    %23 = math.tanh %22 : vector<8x32xf32>
    %24 = vector.extract_strided_slice %9 {offsets = [0, 96], sizes = [8, 32], strides = [1, 1]} : vector<8x128xf32> to vector<8x32xf32>
    %25 = arith.negf %24 : vector<8x32xf32>
    %26 = math.exp %25 : vector<8x32xf32>
    %cst_11 = arith.constant 1.000000e+00 : f32
    %27 = vector.broadcast %cst_11 : f32 to vector<8x32xf32>
    %28 = arith.addf %27, %26 : vector<8x32xf32>
    %29 = arith.divf %27, %28 : vector<8x32xf32>
    %30 = arith.mulf %21, %3 : vector<8x32xf32>
    %31 = arith.mulf %15, %23 : vector<8x32xf32>
    %32 = arith.addf %30, %31 : vector<8x32xf32>
    %33 = math.tanh %32 : vector<8x32xf32>
    %34 = arith.mulf %29, %33 : vector<8x32xf32>
    %35 = arith.index_cast %c0_i32 : i32 to index
    %c0_12 = arith.constant 0 : index
    %c0_13 = arith.constant 0 : index
    %36 = vector.load %arg6[%35, %c0_12, %c0_13] : memref<7x8x32xf32, #tpu.memory_space<vmem>>, vector<1x8x32xf32>
    %37 = vector.shape_cast %36 : vector<1x8x32xf32> to vector<8x32xf32>
    %38 = vector.shape_cast %34 : vector<8x32xf32> to vector<1x8x32xf32>
    tpu.vector_store %arg6[%35, %c0_12, %c0_13], %38 {strides = array<i32>} : memref<7x8x32xf32, #tpu.memory_space<vmem>>, vector<1x8x32xf32>,
    %c1_i32 = arith.constant 1 : i32
    %39 = arith.index_cast %c1_i32 : i32 to index
    %c0_14 = arith.constant 0 : index
    %c0_15 = arith.constant 0 : index
    %40 = vector.load %arg1[%39, %c0_14, %c0_15] : memref<7x8x128xf32, #tpu.memory_space<vmem>>, vector<1x8x128xf32>
    %41 = vector.shape_cast %40 : vector<1x8x128xf32> to vector<8x128xf32>
    %42 = arith.addf %41, %0 : vector<8x128xf32>
    %cst_16 = arith.constant dense<0.000000e+00> : vector<8x128xf32>
    %43 = tpu.matmul %34, %1, %cst_16 {dimension_numbers = #tpu.dot_dimension_numbers<[1], [0], [0], [1], [0, 0, 1, 1], [], []>} : vector<8x32xf32>, vector<32x128xf32>, vector<8x128xf32> -> vector<8x128xf32>
    %44 = arith.addf %42, %43 : vector<8x128xf32>
    %45 = vector.extract_strided_slice %44 {offsets = [0, 0], sizes = [8, 32], strides = [1, 1]} : vector<8x128xf32> to vector<8x32xf32>
    %46 = arith.negf %45 : vector<8x32xf32>
    %47 = math.exp %46 : vector<8x32xf32>
    %cst_17 = arith.constant 1.000000e+00 : f32
    %48 = vector.broadcast %cst_17 : f32 to vector<8x32xf32>
    %49 = arith.addf %48, %47 : vector<8x32xf32>
    %50 = arith.divf %48, %49 : vector<8x32xf32>
    %51 = vector.extract_strided_slice %44 {offsets = [0, 32], sizes = [8, 32], strides = [1, 1]} : vector<8x128xf32> to vector<8x32xf32>
    %52 = arith.negf %51 : vector<8x32xf32>
    %53 = math.exp %52 : vector<8x32xf32>
    %cst_18 = arith.constant 1.000000e+00 : f32
    %54 = vector.broadcast %cst_18 : f32 to vector<8x32xf32>
    %55 = arith.addf %54, %53 : vector<8x32xf32>
    %56 = arith.divf %54, %55 : vector<8x32xf32>
    %57 = vector.extract_strided_slice %44 {offsets = [0, 64], sizes = [8, 32], strides = [1, 1]} : vector<8x128xf32> to vector<8x32xf32>
    %58 = math.tanh %57 : vector<8x32xf32>
    %59 = vector.extract_strided_slice %44 {offsets = [0, 96], sizes = [8, 32], strides = [1, 1]} : vector<8x128xf32> to vector<8x32xf32>
    %60 = arith.negf %59 : vector<8x32xf32>
    %61 = math.exp %60 : vector<8x32xf32>
    %cst_19 = arith.constant 1.000000e+00 : f32
    %62 = vector.broadcast %cst_19 : f32 to vector<8x32xf32>
    %63 = arith.addf %62, %61 : vector<8x32xf32>
    %64 = arith.divf %62, %63 : vector<8x32xf32>
    %65 = arith.mulf %56, %32 : vector<8x32xf32>
    %66 = arith.mulf %50, %58 : vector<8x32xf32>
    %67 = arith.addf %65, %66 : vector<8x32xf32>
    %68 = math.tanh %67 : vector<8x32xf32>
    %69 = arith.mulf %64, %68 : vector<8x32xf32>
    %70 = arith.index_cast %c1_i32 : i32 to index
    %c0_20 = arith.constant 0 : index
    %c0_21 = arith.constant 0 : index
    %71 = vector.load %arg6[%70, %c0_20, %c0_21] : memref<7x8x32xf32, #tpu.memory_space<vmem>>, vector<1x8x32xf32>
    %72 = vector.shape_cast %71 : vector<1x8x32xf32> to vector<8x32xf32>
    %73 = vector.shape_cast %69 : vector<8x32xf32> to vector<1x8x32xf32>
    tpu.vector_store %arg6[%70, %c0_20, %c0_21], %73 {strides = array<i32>} : memref<7x8x32xf32, #tpu.memory_space<vmem>>, vector<1x8x32xf32>,
    %c2_i32 = arith.constant 2 : i32
    %74 = arith.index_cast %c2_i32 : i32 to index
    %c0_22 = arith.constant 0 : index
    %c0_23 = arith.constant 0 : index
    %75 = vector.load %arg1[%74, %c0_22, %c0_23] : memref<7x8x128xf32, #tpu.memory_space<vmem>>, vector<1x8x128xf32>
    %76 = vector.shape_cast %75 : vector<1x8x128xf32> to vector<8x128xf32>
    %77 = arith.addf %76, %0 : vector<8x128xf32>
    %cst_24 = arith.constant dense<0.000000e+00> : vector<8x128xf32>
    %78 = tpu.matmul %69, %1, %cst_24 {dimension_numbers = #tpu.dot_dimension_numbers<[1], [0], [0], [1], [0, 0, 1, 1], [], []>} : vector<8x32xf32>, vector<32x128xf32>, vector<8x128xf32> -> vector<8x128xf32>
    %79 = arith.addf %77, %78 : vector<8x128xf32>
    %80 = vector.extract_strided_slice %79 {offsets = [0, 0], sizes = [8, 32], strides = [1, 1]} : vector<8x128xf32> to vector<8x32xf32>
    %81 = arith.negf %80 : vector<8x32xf32>
    %82 = math.exp %81 : vector<8x32xf32>
    %cst_25 = arith.constant 1.000000e+00 : f32
    %83 = vector.broadcast %cst_25 : f32 to vector<8x32xf32>
    %84 = arith.addf %83, %82 : vector<8x32xf32>
    %85 = arith.divf %83, %84 : vector<8x32xf32>
    %86 = vector.extract_strided_slice %79 {offsets = [0, 32], sizes = [8, 32], strides = [1, 1]} : vector<8x128xf32> to vector<8x32xf32>
    %87 = arith.negf %86 : vector<8x32xf32>
    %88 = math.exp %87 : vector<8x32xf32>
    %cst_26 = arith.constant 1.000000e+00 : f32
    %89 = vector.broadcast %cst_26 : f32 to vector<8x32xf32>
    %90 = arith.addf %89, %88 : vector<8x32xf32>
    %91 = arith.divf %89, %90 : vector<8x32xf32>
    %92 = vector.extract_strided_slice %79 {offsets = [0, 64], sizes = [8, 32], strides = [1, 1]} : vector<8x128xf32> to vector<8x32xf32>
    %93 = math.tanh %92 : vector<8x32xf32>
    %94 = vector.extract_strided_slice %79 {offsets = [0, 96], sizes = [8, 32], strides = [1, 1]} : vector<8x128xf32> to vector<8x32xf32>
    %95 = arith.negf %94 : vector<8x32xf32>
    %96 = math.exp %95 : vector<8x32xf32>
    %cst_27 = arith.constant 1.000000e+00 : f32
    %97 = vector.broadcast %cst_27 : f32 to vector<8x32xf32>
    %98 = arith.addf %97, %96 : vector<8x32xf32>
    %99 = arith.divf %97, %98 : vector<8x32xf32>
    %100 = arith.mulf %91, %67 : vector<8x32xf32>
    %101 = arith.mulf %85, %93 : vector<8x32xf32>
    %102 = arith.addf %100, %101 : vector<8x32xf32>
    %103 = math.tanh %102 : vector<8x32xf32>
    %104 = arith.mulf %99, %103 : vector<8x32xf32>
    %105 = arith.index_cast %c2_i32 : i32 to index
    %c0_28 = arith.constant 0 : index
    %c0_29 = arith.constant 0 : index
    %106 = vector.load %arg6[%105, %c0_28, %c0_29] : memref<7x8x32xf32, #tpu.memory_space<vmem>>, vector<1x8x32xf32>
    %107 = vector.shape_cast %106 : vector<1x8x32xf32> to vector<8x32xf32>
    %108 = vector.shape_cast %104 : vector<8x32xf32> to vector<1x8x32xf32>
    tpu.vector_store %arg6[%105, %c0_28, %c0_29], %108 {strides = array<i32>} : memref<7x8x32xf32, #tpu.memory_space<vmem>>, vector<1x8x32xf32>,
    %c3_i32 = arith.constant 3 : i32
    %109 = arith.index_cast %c3_i32 : i32 to index
    %c0_30 = arith.constant 0 : index
    %c0_31 = arith.constant 0 : index
    %110 = vector.load %arg1[%109, %c0_30, %c0_31] : memref<7x8x128xf32, #tpu.memory_space<vmem>>, vector<1x8x128xf32>
    %111 = vector.shape_cast %110 : vector<1x8x128xf32> to vector<8x128xf32>
    %112 = arith.addf %111, %0 : vector<8x128xf32>
    %cst_32 = arith.constant dense<0.000000e+00> : vector<8x128xf32>
    %113 = tpu.matmul %104, %1, %cst_32 {dimension_numbers = #tpu.dot_dimension_numbers<[1], [0], [0], [1], [0, 0, 1, 1], [], []>} : vector<8x32xf32>, vector<32x128xf32>, vector<8x128xf32> -> vector<8x128xf32>
    %114 = arith.addf %112, %113 : vector<8x128xf32>
    %115 = vector.extract_strided_slice %114 {offsets = [0, 0], sizes = [8, 32], strides = [1, 1]} : vector<8x128xf32> to vector<8x32xf32>
    %116 = arith.negf %115 : vector<8x32xf32>
    %117 = math.exp %116 : vector<8x32xf32>
    %cst_33 = arith.constant 1.000000e+00 : f32
    %118 = vector.broadcast %cst_33 : f32 to vector<8x32xf32>
    %119 = arith.addf %118, %117 : vector<8x32xf32>
    %120 = arith.divf %118, %119 : vector<8x32xf32>
    %121 = vector.extract_strided_slice %114 {offsets = [0, 32], sizes = [8, 32], strides = [1, 1]} : vector<8x128xf32> to vector<8x32xf32>
    %122 = arith.negf %121 : vector<8x32xf32>
    %123 = math.exp %122 : vector<8x32xf32>
    %cst_34 = arith.constant 1.000000e+00 : f32
    %124 = vector.broadcast %cst_34 : f32 to vector<8x32xf32>
    %125 = arith.addf %124, %123 : vector<8x32xf32>
    %126 = arith.divf %124, %125 : vector<8x32xf32>
    %127 = vector.extract_strided_slice %114 {offsets = [0, 64], sizes = [8, 32], strides = [1, 1]} : vector<8x128xf32> to vector<8x32xf32>
    %128 = math.tanh %127 : vector<8x32xf32>
    %129 = vector.extract_strided_slice %114 {offsets = [0, 96], sizes = [8, 32], strides = [1, 1]} : vector<8x128xf32> to vector<8x32xf32>
    %130 = arith.negf %129 : vector<8x32xf32>
    %131 = math.exp %130 : vector<8x32xf32>
    %cst_35 = arith.constant 1.000000e+00 : f32
    %132 = vector.broadcast %cst_35 : f32 to vector<8x32xf32>
    %133 = arith.addf %132, %131 : vector<8x32xf32>
    %134 = arith.divf %132, %133 : vector<8x32xf32>
    %135 = arith.mulf %126, %102 : vector<8x32xf32>
    %136 = arith.mulf %120, %128 : vector<8x32xf32>
    %137 = arith.addf %135, %136 : vector<8x32xf32>
    %138 = math.tanh %137 : vector<8x32xf32>
    %139 = arith.mulf %134, %138 : vector<8x32xf32>
    %140 = arith.index_cast %c3_i32 : i32 to index
    %c0_36 = arith.constant 0 : index
    %c0_37 = arith.constant 0 : index
    %141 = vector.load %arg6[%140, %c0_36, %c0_37] : memref<7x8x32xf32, #tpu.memory_space<vmem>>, vector<1x8x32xf32>
    %142 = vector.shape_cast %141 : vector<1x8x32xf32> to vector<8x32xf32>
    %143 = vector.shape_cast %139 : vector<8x32xf32> to vector<1x8x32xf32>
    tpu.vector_store %arg6[%140, %c0_36, %c0_37], %143 {strides = array<i32>} : memref<7x8x32xf32, #tpu.memory_space<vmem>>, vector<1x8x32xf32>,
    %c4_i32 = arith.constant 4 : i32
    %144 = arith.index_cast %c4_i32 : i32 to index
    %c0_38 = arith.constant 0 : index
    %c0_39 = arith.constant 0 : index
    %145 = vector.load %arg1[%144, %c0_38, %c0_39] : memref<7x8x128xf32, #tpu.memory_space<vmem>>, vector<1x8x128xf32>
    %146 = vector.shape_cast %145 : vector<1x8x128xf32> to vector<8x128xf32>
    %147 = arith.addf %146, %0 : vector<8x128xf32>
    %cst_40 = arith.constant dense<0.000000e+00> : vector<8x128xf32>
    %148 = tpu.matmul %139, %1, %cst_40 {dimension_numbers = #tpu.dot_dimension_numbers<[1], [0], [0], [1], [0, 0, 1, 1], [], []>} : vector<8x32xf32>, vector<32x128xf32>, vector<8x128xf32> -> vector<8x128xf32>
    %149 = arith.addf %147, %148 : vector<8x128xf32>
    %150 = vector.extract_strided_slice %149 {offsets = [0, 0], sizes = [8, 32], strides = [1, 1]} : vector<8x128xf32> to vector<8x32xf32>
    %151 = arith.negf %150 : vector<8x32xf32>
    %152 = math.exp %151 : vector<8x32xf32>
    %cst_41 = arith.constant 1.000000e+00 : f32
    %153 = vector.broadcast %cst_41 : f32 to vector<8x32xf32>
    %154 = arith.addf %153, %152 : vector<8x32xf32>
    %155 = arith.divf %153, %154 : vector<8x32xf32>
    %156 = vector.extract_strided_slice %149 {offsets = [0, 32], sizes = [8, 32], strides = [1, 1]} : vector<8x128xf32> to vector<8x32xf32>
    %157 = arith.negf %156 : vector<8x32xf32>
    %158 = math.exp %157 : vector<8x32xf32>
    %cst_42 = arith.constant 1.000000e+00 : f32
    %159 = vector.broadcast %cst_42 : f32 to vector<8x32xf32>
    %160 = arith.addf %159, %158 : vector<8x32xf32>
    %161 = arith.divf %159, %160 : vector<8x32xf32>
    %162 = vector.extract_strided_slice %149 {offsets = [0, 64], sizes = [8, 32], strides = [1, 1]} : vector<8x128xf32> to vector<8x32xf32>
    %163 = math.tanh %162 : vector<8x32xf32>
    %164 = vector.extract_strided_slice %149 {offsets = [0, 96], sizes = [8, 32], strides = [1, 1]} : vector<8x128xf32> to vector<8x32xf32>
    %165 = arith.negf %164 : vector<8x32xf32>
    %166 = math.exp %165 : vector<8x32xf32>
    %cst_43 = arith.constant 1.000000e+00 : f32
    %167 = vector.broadcast %cst_43 : f32 to vector<8x32xf32>
    %168 = arith.addf %167, %166 : vector<8x32xf32>
    %169 = arith.divf %167, %168 : vector<8x32xf32>
    %170 = arith.mulf %161, %137 : vector<8x32xf32>
    %171 = arith.mulf %155, %163 : vector<8x32xf32>
    %172 = arith.addf %170, %171 : vector<8x32xf32>
    %173 = math.tanh %172 : vector<8x32xf32>
    %174 = arith.mulf %169, %173 : vector<8x32xf32>
    %175 = arith.index_cast %c4_i32 : i32 to index
    %c0_44 = arith.constant 0 : index
    %c0_45 = arith.constant 0 : index
    %176 = vector.load %arg6[%175, %c0_44, %c0_45] : memref<7x8x32xf32, #tpu.memory_space<vmem>>, vector<1x8x32xf32>
    %177 = vector.shape_cast %176 : vector<1x8x32xf32> to vector<8x32xf32>
    %178 = vector.shape_cast %174 : vector<8x32xf32> to vector<1x8x32xf32>
    tpu.vector_store %arg6[%175, %c0_44, %c0_45], %178 {strides = array<i32>} : memref<7x8x32xf32, #tpu.memory_space<vmem>>, vector<1x8x32xf32>,
    %c5_i32 = arith.constant 5 : i32
    %179 = arith.index_cast %c5_i32 : i32 to index
    %c0_46 = arith.constant 0 : index
    %c0_47 = arith.constant 0 : index
    %180 = vector.load %arg1[%179, %c0_46, %c0_47] : memref<7x8x128xf32, #tpu.memory_space<vmem>>, vector<1x8x128xf32>
    %181 = vector.shape_cast %180 : vector<1x8x128xf32> to vector<8x128xf32>
    %182 = arith.addf %181, %0 : vector<8x128xf32>
    %cst_48 = arith.constant dense<0.000000e+00> : vector<8x128xf32>
    %183 = tpu.matmul %174, %1, %cst_48 {dimension_numbers = #tpu.dot_dimension_numbers<[1], [0], [0], [1], [0, 0, 1, 1], [], []>} : vector<8x32xf32>, vector<32x128xf32>, vector<8x128xf32> -> vector<8x128xf32>
    %184 = arith.addf %182, %183 : vector<8x128xf32>
    %185 = vector.extract_strided_slice %184 {offsets = [0, 0], sizes = [8, 32], strides = [1, 1]} : vector<8x128xf32> to vector<8x32xf32>
    %186 = arith.negf %185 : vector<8x32xf32>
    %187 = math.exp %186 : vector<8x32xf32>
    %cst_49 = arith.constant 1.000000e+00 : f32
    %188 = vector.broadcast %cst_49 : f32 to vector<8x32xf32>
    %189 = arith.addf %188, %187 : vector<8x32xf32>
    %190 = arith.divf %188, %189 : vector<8x32xf32>
    %191 = vector.extract_strided_slice %184 {offsets = [0, 32], sizes = [8, 32], strides = [1, 1]} : vector<8x128xf32> to vector<8x32xf32>
    %192 = arith.negf %191 : vector<8x32xf32>
    %193 = math.exp %192 : vector<8x32xf32>
    %cst_50 = arith.constant 1.000000e+00 : f32
    %194 = vector.broadcast %cst_50 : f32 to vector<8x32xf32>
    %195 = arith.addf %194, %193 : vector<8x32xf32>
    %196 = arith.divf %194, %195 : vector<8x32xf32>
    %197 = vector.extract_strided_slice %184 {offsets = [0, 64], sizes = [8, 32], strides = [1, 1]} : vector<8x128xf32> to vector<8x32xf32>
    %198 = math.tanh %197 : vector<8x32xf32>
    %199 = vector.extract_strided_slice %184 {offsets = [0, 96], sizes = [8, 32], strides = [1, 1]} : vector<8x128xf32> to vector<8x32xf32>
    %200 = arith.negf %199 : vector<8x32xf32>
    %201 = math.exp %200 : vector<8x32xf32>
    %cst_51 = arith.constant 1.000000e+00 : f32
    %202 = vector.broadcast %cst_51 : f32 to vector<8x32xf32>
    %203 = arith.addf %202, %201 : vector<8x32xf32>
    %204 = arith.divf %202, %203 : vector<8x32xf32>
    %205 = arith.mulf %196, %172 : vector<8x32xf32>
    %206 = arith.mulf %190, %198 : vector<8x32xf32>
    %207 = arith.addf %205, %206 : vector<8x32xf32>
    %208 = math.tanh %207 : vector<8x32xf32>
    %209 = arith.mulf %204, %208 : vector<8x32xf32>
    %210 = arith.index_cast %c5_i32 : i32 to index
    %c0_52 = arith.constant 0 : index
    %c0_53 = arith.constant 0 : index
    %211 = vector.load %arg6[%210, %c0_52, %c0_53] : memref<7x8x32xf32, #tpu.memory_space<vmem>>, vector<1x8x32xf32>
    %212 = vector.shape_cast %211 : vector<1x8x32xf32> to vector<8x32xf32>
    %213 = vector.shape_cast %209 : vector<8x32xf32> to vector<1x8x32xf32>
    tpu.vector_store %arg6[%210, %c0_52, %c0_53], %213 {strides = array<i32>} : memref<7x8x32xf32, #tpu.memory_space<vmem>>, vector<1x8x32xf32>,
    %c6_i32 = arith.constant 6 : i32
    %214 = arith.index_cast %c6_i32 : i32 to index
    %c0_54 = arith.constant 0 : index
    %c0_55 = arith.constant 0 : index
    %215 = vector.load %arg1[%214, %c0_54, %c0_55] : memref<7x8x128xf32, #tpu.memory_space<vmem>>, vector<1x8x128xf32>
    %216 = vector.shape_cast %215 : vector<1x8x128xf32> to vector<8x128xf32>
    %217 = arith.addf %216, %0 : vector<8x128xf32>
    %cst_56 = arith.constant dense<0.000000e+00> : vector<8x128xf32>
    %218 = tpu.matmul %209, %1, %cst_56 {dimension_numbers = #tpu.dot_dimension_numbers<[1], [0], [0], [1], [0, 0, 1, 1], [], []>} : vector<8x32xf32>, vector<32x128xf32>, vector<8x128xf32> -> vector<8x128xf32>
    %219 = arith.addf %217, %218 : vector<8x128xf32>
    %220 = vector.extract_strided_slice %219 {offsets = [0, 0], sizes = [8, 32], strides = [1, 1]} : vector<8x128xf32> to vector<8x32xf32>
    %221 = arith.negf %220 : vector<8x32xf32>
    %222 = math.exp %221 : vector<8x32xf32>
    %cst_57 = arith.constant 1.000000e+00 : f32
    %223 = vector.broadcast %cst_57 : f32 to vector<8x32xf32>
    %224 = arith.addf %223, %222 : vector<8x32xf32>
    %225 = arith.divf %223, %224 : vector<8x32xf32>
    %226 = vector.extract_strided_slice %219 {offsets = [0, 32], sizes = [8, 32], strides = [1, 1]} : vector<8x128xf32> to vector<8x32xf32>
    %227 = arith.negf %226 : vector<8x32xf32>
    %228 = math.exp %227 : vector<8x32xf32>
    %cst_58 = arith.constant 1.000000e+00 : f32
    %229 = vector.broadcast %cst_58 : f32 to vector<8x32xf32>
    %230 = arith.addf %229, %228 : vector<8x32xf32>
    %231 = arith.divf %229, %230 : vector<8x32xf32>
    %232 = vector.extract_strided_slice %219 {offsets = [0, 64], sizes = [8, 32], strides = [1, 1]} : vector<8x128xf32> to vector<8x32xf32>
    %233 = math.tanh %232 : vector<8x32xf32>
    %234 = vector.extract_strided_slice %219 {offsets = [0, 96], sizes = [8, 32], strides = [1, 1]} : vector<8x128xf32> to vector<8x32xf32>
    %235 = arith.negf %234 : vector<8x32xf32>
    %236 = math.exp %235 : vector<8x32xf32>
    %cst_59 = arith.constant 1.000000e+00 : f32
    %237 = vector.broadcast %cst_59 : f32 to vector<8x32xf32>
    %238 = arith.addf %237, %236 : vector<8x32xf32>
    %239 = arith.divf %237, %238 : vector<8x32xf32>
    %240 = arith.mulf %231, %207 : vector<8x32xf32>
    %241 = arith.mulf %225, %233 : vector<8x32xf32>
    %242 = arith.addf %240, %241 : vector<8x32xf32>
    %243 = math.tanh %242 : vector<8x32xf32>
    %244 = arith.mulf %239, %243 : vector<8x32xf32>
    %245 = arith.index_cast %c6_i32 : i32 to index
    %c0_60 = arith.constant 0 : index
    %c0_61 = arith.constant 0 : index
    %246 = vector.load %arg6[%245, %c0_60, %c0_61] : memref<7x8x32xf32, #tpu.memory_space<vmem>>, vector<1x8x32xf32>
    %247 = vector.shape_cast %246 : vector<1x8x32xf32> to vector<8x32xf32>
    %248 = vector.shape_cast %244 : vector<8x32xf32> to vector<1x8x32xf32>
    tpu.vector_store %arg6[%245, %c0_60, %c0_61], %248 {strides = array<i32>} : memref<7x8x32xf32, #tpu.memory_space<vmem>>, vector<1x8x32xf32>,
    %c7_i32 = arith.constant 7 : i32
    %c0_62 = arith.constant 0 : index
    %c0_63 = arith.constant 0 : index
    %249 = vector.load %arg7[%c0_62, %c0_63] : memref<8x32xf32, #tpu.memory_space<vmem>>, vector<8x32xf32>
    tpu.vector_store %arg7[%c0_62, %c0_63], %244 {strides = array<i32>} : memref<8x32xf32, #tpu.memory_space<vmem>>, vector<8x32xf32>,
    %c0_64 = arith.constant 0 : index
    %c0_65 = arith.constant 0 : index
    %250 = vector.load %arg8[%c0_64, %c0_65] : memref<8x32xf32, #tpu.memory_space<vmem>>, vector<8x32xf32>
    tpu.vector_store %arg8[%c0_64, %c0_65], %242 {strides = array<i32>} : memref<8x32xf32, #tpu.memory_space<vmem>>, vector<8x32xf32>,
    return
  }
  func.func @transform_0(%arg0: i32) -> (i32, i32, i32) {
    %c0_i32 = arith.constant 0 : i32
    %c0_i32_0 = arith.constant 0 : i32
    %c0_i32_1 = arith.constant 0 : i32
    %c0_i32_2 = arith.constant 0 : i32
    return %c0_i32, %c0_i32_0, %c0_i32_1 : i32, i32, i32
  }
  func.func @transform_1(%arg0: i32) -> (i32, i32) {
    %c0_i32 = arith.constant 0 : i32
    %c0_i32_0 = arith.constant 0 : i32
    %c0_i32_1 = arith.constant 0 : i32
    return %c0_i32, %c0_i32_0 : i32, i32
  }
  func.func @transform_2(%arg0: i32) -> (i32, i32) {
    %c0_i32 = arith.constant 0 : i32
    %c0_i32_0 = arith.constant 0 : i32
    %c0_i32_1 = arith.constant 0 : i32
    return %c0_i32, %c0_i32_0 : i32, i32
  }
  func.func @transform_3(%arg0: i32) -> (i32, i32) {
    %c0_i32 = arith.constant 0 : i32
    %c0_i32_0 = arith.constant 0 : i32
    %c0_i32_1 = arith.constant 0 : i32
    return %c0_i32, %c0_i32_0 : i32, i32
  }
  func.func @transform_4(%arg0: i32) -> (i32, i32) {
    %c0_i32 = arith.constant 0 : i32
    %c0_i32_0 = arith.constant 0 : i32
    %c0_i32_1 = arith.constant 0 : i32
    return %c0_i32, %c0_i32_0 : i32, i32
  }
  func.func @transform_5(%arg0: i32) -> (i32, i32, i32) {
    %c0_i32 = arith.constant 0 : i32
    %c0_i32_0 = arith.constant 0 : i32
    %c0_i32_1 = arith.constant 0 : i32
    %c0_i32_2 = arith.constant 0 : i32
    return %c0_i32, %c0_i32_0, %c0_i32_1 : i32, i32, i32
  }
  func.func @transform_6(%arg0: i32) -> (i32, i32) {
    %c0_i32 = arith.constant 0 : i32
    %c0_i32_0 = arith.constant 0 : i32
    %c0_i32_1 = arith.constant 0 : i32
    return %c0_i32, %c0_i32_0 : i32, i32
  }
  func.func @transform_7(%arg0: i32) -> (i32, i32) {
    %c0_i32 = arith.constant 0 : i32
    %c0_i32_0 = arith.constant 0 : i32
    %c0_i32_1 = arith.constant 0 : i32
    return %c0_i32, %c0_i32_0 : i32, i32
  }
}

</mosaic_0001>

<bundles_post_ra>
// kernel: decoder_forward.6
= control target key start
LH: loop header
LB: loop body
LE: loop exit
PB: predicated region body
PF: predicated region fallthrough
CT: control target
= control target key end

     0   :  { %vm14_vm0 = vcmask 130048   ;;  %s71_s1 = inlined_call_operand.vmem [shape: f32[16,128], index: 1, kind: input, shape index: {}]   ;;  %s72_s0 = inlined_call_operand.vmem [shape: f32[8,16], index: 0, kind: input, shape index: {}]   ;;  %s73_s2 = inlined_call_operand.vmem [shape: f32[8,128], index: 2, kind: output, shape index: {}]  }
   0x1   :  { %v13_v0 = vld [vmem:[%s71_s1 + $0x8] sm:$0xff]  ;;  %v12_v1 = vld [vmem:[%s71_s1] sm:$0xff] }
   0x2   :  { %32 = vmatpush.msra.mxu0 %v13_v0  ;;  %v11_v2 = vld [vmem:[%s72_s0] sm:$0xff] }
   0x4   :  { %33 = vmatpush.msra.mxu0 %v12_v1 }
   0x5   :  { %43 = vmatmul.msk.f32.vlgmr.msra.gmra.mxu0 %vm14_vm0, %v11_v2 }
  0x82   :  { %v35_v3 = vpop.f32.mrf.mxu0 }
  0x83   :  { %38 = vst [vmem:[%s73_s2] sm:$0xff] %v35_v3 }

// kernel: decoder_forward.5
= control target key start
LH: loop header
LB: loop body
LE: loop exit
PB: predicated region body
PF: predicated region fallthrough
CT: control target
= control target key end

     0   :  { %vm674_vm0 = vcmask 64512   ;;  %s1575_s1 = inlined_call_operand.vmem [shape: f32[2048,8], index: 1, kind: input, shape index: {}]   ;;  %s1576_s0 = inlined_call_operand.vmem [shape: f32[16,2048], index: 0, kind: input, shape index: {}]   ;;  %s1577_s2 = inlined_call_operand.vmem [shape: f32[1,8], index: 2, kind: input, shape index: {}]   ;;  %s1578_s3 = inlined_call_operand.vmem [shape: f32[16,8], index: 3, kind: output, shape index: {}]  }
   0x1   :  { %v61_v0 = vld [vmem:[%s1575_s1 + $0x78] sm:$0xff]  ;;  %v60_v2 = vld [vmem:[%s1575_s1 + $0x70] sm:$0xff]  ;;  %v59_v6 = vld [vmem:[%s1575_s1 + $0x68] sm:$0xff] }
   0x2   :  { %v93_v1 = vld [vmem:[%s1575_s1 + $0x178] sm:$0xff]  ;;  %306 = vmatpush.msra.mxu0 %v61_v0  ;;  %v92_v4 = vld [vmem:[%s1575_s1 + $0x170] sm:$0xff]  ;;  %v91_v8 = vld [vmem:[%s1575_s1 + $0x168] sm:$0xff] }
   0x3   :  { %352 = vmatpush.msra.mxu2 %v93_v1  ;;  %v77_v3 = vld [vmem:[%s1575_s1 + $0xf8] sm:$0xff]  ;;  %v76_v7 = vld [vmem:[%s1575_s1 + $0xf0] sm:$0xff]  ;;  %v75_v10 = vld [vmem:[%s1575_s1 + $0xe8] sm:$0xff] }
   0x4   :  { %v109_v5 = vld [vmem:[%s1575_s1 + $0x1f8] sm:$0xff]  ;;  %329 = vmatpush.msra.mxu1 %v77_v3  ;;  %307 = vmatpush.msra.mxu0 %v60_v2  ;;  %v108_v9 = vld [vmem:[%s1575_s1 + $0x1f0] sm:$0xff]  ;;  %v58_v11 = vld [vmem:[%s1575_s1 + $0x60] sm:$0xff] }
   0x5   :  { %375 = vmatpush.msra.mxu3 %v109_v5  ;;  %353 = vmatpush.msra.mxu2 %v92_v4  ;;  %v90_v12 = vld [vmem:[%s1575_s1 + $0x160] sm:$0xff]  ;;  %v107_v13 = vld [vmem:[%s1575_s1 + $0x1e8] sm:$0xff]  ;;  %v57_v16 = vld [vmem:[%s1575_s1 + $0x58] sm:$0xff] }
   0x6   :  { %330 = vmatpush.msra.mxu1 %v76_v7  ;;  %308 = vmatpush.msra.mxu0 %v59_v6  ;;  %v74_v14 = vld [vmem:[%s1575_s1 + $0xe0] sm:$0xff]  ;;  %v89_v17 = vld [vmem:[%s1575_s1 + $0x158] sm:$0xff]  ;;  %v56_v20 = vld [vmem:[%s1575_s1 + $0x50] sm:$0xff] }
   0x7   :  { %376 = vmatpush.msra.mxu3 %v108_v9  ;;  %354 = vmatpush.msra.mxu2 %v91_v8  ;;  %v106_v15 = vld [vmem:[%s1575_s1 + $0x1e0] sm:$0xff]  ;;  %v73_v18 = vld [vmem:[%s1575_s1 + $0xd8] sm:$0xff]  ;;  %v88_v21 = vld [vmem:[%s1575_s1 + $0x150] sm:$0xff] }
   0x8   :  { %331 = vmatpush.msra.mxu1 %v75_v10  ;;  %309 = vmatpush.msra.mxu0 %v58_v11  ;;  %v105_v19 = vld [vmem:[%s1575_s1 + $0x1d8] sm:$0xff]  ;;  %v72_v22 = vld [vmem:[%s1575_s1 + $0xd0] sm:$0xff]  ;;  %v55_v24 = vld [vmem:[%s1575_s1 + $0x48] sm:$0xff] }
   0x9   :  { %377 = vmatpush.msra.mxu3 %v107_v13  ;;  %355 = vmatpush.msra.mxu2 %v90_v12  ;;  %v104_v23 = vld [vmem:[%s1575_s1 + $0x1d0] sm:$0xff]  ;;  %v87_v25 = vld [vmem:[%s1575_s1 + $0x148] sm:$0xff]  ;;  %v54_v28 = vld [vmem:[%s1575_s1 + $0x40] sm:$0xff] }
   0xa   :  { %332 = vmatpush.msra.mxu1 %v74_v14  ;;  %310 = vmatpush.msra.mxu0 %v57_v16  ;;  %v71_v26 = vld [vmem:[%s1575_s1 + $0xc8] sm:$0xff]  ;;  %v86_v29 = vld [vmem:[%s1575_s1 + $0x140] sm:$0xff]  ;;  %v53_v32 = vld [vmem:[%s1575_s1 + $0x38] sm:$0xff] }
   0xb   :  { %378 = vmatpush.msra.mxu3 %v106_v15  ;;  %356 = vmatpush.msra.mxu2 %v89_v17  ;;  %v103_v27 = vld [vmem:[%s1575_s1 + $0x1c8] sm:$0xff]  ;;  %v70_v30 = vld [vmem:[%s1575_s1 + $0xc0] sm:$0xff]  ;;  %v85_v33 = vld [vmem:[%s1575_s1 + $0x138] sm:$0xff] }
   0xc   :  { %333 = vmatpush.msra.mxu1 %v73_v18  ;;  %311 = vmatpush.msra.mxu0 %v56_v20  ;;  %v102_v31 = vld [vmem:[%s1575_s1 + $0x1c0] sm:$0xff]  ;;  %v69_v34 = vld [vmem:[%s1575_s1 + $0xb8] sm:$0xff]  ;;  %v52_v36 = vld [vmem:[%s1575_s1 + $0x30] sm:$0xff] }
   0xd   :  { %379 = vmatpush.msra.mxu3 %v105_v19  ;;  %357 = vmatpush.msra.mxu2 %v88_v21  ;;  %v101_v35 = vld [vmem:[%s1575_s1 + $0x1b8] sm:$0xff]  ;;  %v84_v37 = vld [vmem:[%s1575_s1 + $0x130] sm:$0xff]  ;;  %v51_v40 = vld [vmem:[%s1575_s1 + $0x28] sm:$0xff] }
   0xe   :  { %334 = vmatpush.msra.mxu1 %v72_v22  ;;  %312 = vmatpush.msra.mxu0 %v55_v24  ;;  %v68_v38 = vld [vmem:[%s1575_s1 + $0xb0] sm:$0xff]  ;;  %v83_v41 = vld [vmem:[%s1575_s1 + $0x128] sm:$0xff]  ;;  %v50_v44 = vld [vmem:[%s1575_s1 + $0x20] sm:$0xff] }
   0xf   :  { %380 = vmatpush.msra.mxu3 %v104_v23  ;;  %358 = vmatpush.msra.mxu2 %v87_v25  ;;  %v100_v39 = vld [vmem:[%s1575_s1 + $0x1b0] sm:$0xff]  ;;  %v67_v42 = vld [vmem:[%s1575_s1 + $0xa8] sm:$0xff]  ;;  %v82_v45 = vld [vmem:[%s1575_s1 + $0x120] sm:$0xff] }
  0x10   :  { %335 = vmatpush.msra.mxu1 %v71_v26  ;;  %313 = vmatpush.msra.mxu0 %v54_v28  ;;  %v99_v43 = vld [vmem:[%s1575_s1 + $0x1a8] sm:$0xff]  ;;  %v66_v46 = vld [vmem:[%s1575_s1 + $0xa0] sm:$0xff]  ;;  %v49_v48 = vld [vmem:[%s1575_s1 + $0x18] sm:$0xff] }
  0x11   :  { %381 = vmatpush.msra.mxu3 %v103_v27  ;;  %359 = vmatpush.msra.mxu2 %v86_v29  ;;  %v98_v47 = vld [vmem:[%s1575_s1 + $0x1a0] sm:$0xff]  ;;  %v81_v49 = vld [vmem:[%s1575_s1 + $0x118] sm:$0xff]  ;;  %v48_v52 = vld [vmem:[%s1575_s1 + $0x10] sm:$0xff] }
  0x12   :  { %336 = vmatpush.msra.mxu1 %v70_v30  ;;  %314 = vmatpush.msra.mxu0 %v53_v32  ;;  %v65_v50 = vld [vmem:[%s1575_s1 + $0x98] sm:$0xff]  ;;  %v80_v53 = vld [vmem:[%s1575_s1 + $0x110] sm:$0xff]  ;;  %v47_v56 = vld [vmem:[%s1575_s1 + $0x8] sm:$0xff] }
  0x13   :  { %382 = vmatpush.msra.mxu3 %v102_v31  ;;  %360 = vmatpush.msra.mxu2 %v85_v33  ;;  %v97_v51 = vld [vmem:[%s1575_s1 + $0x198] sm:$0xff]  ;;  %v64_v54 = vld [vmem:[%s1575_s1 + $0x90] sm:$0xff]  ;;  %v79_v57 = vld [vmem:[%s1575_s1 + $0x108] sm:$0xff] }
  0x14   :  { %337 = vmatpush.msra.mxu1 %v69_v34  ;;  %315 = vmatpush.msra.mxu0 %v52_v36  ;;  %v96_v55 = vld [vmem:[%s1575_s1 + $0x190] sm:$0xff]  ;;  %v63_v58 = vld [vmem:[%s1575_s1 + $0x88] sm:$0xff]  ;;  %v46_v60 = vld [vmem:[%s1575_s1] sm:$0xff] }
  0x15   :  { %383 = vmatpush.msra.mxu3 %v101_v35  ;;  %361 = vmatpush.msra.mxu2 %v84_v37  ;;  %v95_v59 = vld [vmem:[%s1575_s1 + $0x188] sm:$0xff]  ;;  %v78_v61 = vld [vmem:[%s1575_s1 + $0x100] sm:$0xff]  ;;  %v125_v62 = vld [vmem:[%s1575_s1 + $0x278] sm:$0xff] }
  0x16   :  { %338 = vmatpush.msra.mxu1 %v68_v38  ;;  %316 = vmatpush.msra.mxu0 %v51_v40  ;;  %v157_v63 = vld [vmem:[%s1575_s1 + $0x378] sm:$0xff]  ;;  %v62_v0 = vld [vmem:[%s1575_s1 + $0x80] sm:$0xff]  ;;  %v124_v2 = vld [vmem:[%s1575_s1 + $0x270] sm:$0xff] }
  0x17   :  { %384 = vmatpush.msra.mxu3 %v100_v39  ;;  %362 = vmatpush.msra.mxu2 %v83_v41  ;;  %v94_v1 = vld [vmem:[%s1575_s1 + $0x180] sm:$0xff]  ;;  %v141_v3 = vld [vmem:[%s1575_s1 + $0x2f8] sm:$0xff]  ;;  %v156_v4 = vld [vmem:[%s1575_s1 + $0x370] sm:$0xff] }
  0x18   :  { %339 = vmatpush.msra.mxu1 %v67_v42  ;;  %317 = vmatpush.msra.mxu0 %v50_v44  ;;  %v173_v5 = vld [vmem:[%s1575_s1 + $0x3f8] sm:$0xff]  ;;  %v123_v6 = vld [vmem:[%s1575_s1 + $0x268] sm:$0xff]  ;;  %v140_v7 = vld [vmem:[%s1575_s1 + $0x2f0] sm:$0xff] }
  0x19   :  { %385 = vmatpush.msra.mxu3 %v99_v43  ;;  %363 = vmatpush.msra.mxu2 %v82_v45  ;;  %v155_v8 = vld [vmem:[%s1575_s1 + $0x368] sm:$0xff]  ;;  %v172_v9 = vld [vmem:[%s1575_s1 + $0x3f0] sm:$0xff]  ;;  %v122_v10 = vld [vmem:[%s1575_s1 + $0x260] sm:$0xff] }
  0x1a   :  { %340 = vmatpush.msra.mxu1 %v66_v46  ;;  %318 = vmatpush.msra.mxu0 %v49_v48  ;;  %v139_v11 = vld [vmem:[%s1575_s1 + $0x2e8] sm:$0xff]  ;;  %v154_v12 = vld [vmem:[%s1575_s1 + $0x360] sm:$0xff]  ;;  %v121_v14 = vld [vmem:[%s1575_s1 + $0x258] sm:$0xff] }
  0x1b   :  { %386 = vmatpush.msra.mxu3 %v98_v47  ;;  %364 = vmatpush.msra.mxu2 %v81_v49  ;;  %v171_v13 = vld [vmem:[%s1575_s1 + $0x3e8] sm:$0xff]  ;;  %v138_v15 = vld [vmem:[%s1575_s1 + $0x2e0] sm:$0xff]  ;;  %v153_v16 = vld [vmem:[%s1575_s1 + $0x358] sm:$0xff] }
  0x1c   :  { %341 = vmatpush.msra.mxu1 %v65_v50  ;;  %319 = vmatpush.msra.mxu0 %v48_v52  ;;  %v170_v17 = vld [vmem:[%s1575_s1 + $0x3e0] sm:$0xff]  ;;  %v120_v18 = vld [vmem:[%s1575_s1 + $0x250] sm:$0xff]  ;;  %v137_v19 = vld [vmem:[%s1575_s1 + $0x2d8] sm:$0xff] }
  0x1d   :  { %387 = vmatpush.msra.mxu3 %v97_v51  ;;  %365 = vmatpush.msra.mxu2 %v80_v53  ;;  %v152_v20 = vld [vmem:[%s1575_s1 + $0x350] sm:$0xff]  ;;  %v169_v21 = vld [vmem:[%s1575_s1 + $0x3d8] sm:$0xff]  ;;  %v119_v22 = vld [vmem:[%s1575_s1 + $0x248] sm:$0xff] }
  0x1e   :  { %342 = vmatpush.msra.mxu1 %v64_v54  ;;  %320 = vmatpush.msra.mxu0 %v47_v56  ;;  %v136_v23 = vld [vmem:[%s1575_s1 + $0x2d0] sm:$0xff]  ;;  %v151_v24 = vld [vmem:[%s1575_s1 + $0x348] sm:$0xff]  ;;  %v118_v26 = vld [vmem:[%s1575_s1 + $0x240] sm:$0xff] }
  0x1f   :  { %388 = vmatpush.msra.mxu3 %v96_v55  ;;  %366 = vmatpush.msra.mxu2 %v79_v57  ;;  %v168_v25 = vld [vmem:[%s1575_s1 + $0x3d0] sm:$0xff]  ;;  %v135_v27 = vld [vmem:[%s1575_s1 + $0x2c8] sm:$0xff]  ;;  %v150_v28 = vld [vmem:[%s1575_s1 + $0x340] sm:$0xff] }
  0x20   :  { %343 = vmatpush.msra.mxu1 %v63_v58  ;;  %321 = vmatpush.msra.mxu0 %v46_v60  ;;  %v167_v29 = vld [vmem:[%s1575_s1 + $0x3c8] sm:$0xff]  ;;  %v117_v30 = vld [vmem:[%s1575_s1 + $0x238] sm:$0xff]  ;;  %v134_v31 = vld [vmem:[%s1575_s1 + $0x2c0] sm:$0xff] }
  0x21   :  { %389 = vmatpush.msra.mxu3 %v95_v59  ;;  %367 = vmatpush.msra.mxu2 %v78_v61  ;;  %v149_v32 = vld [vmem:[%s1575_s1 + $0x338] sm:$0xff]  ;;  %v166_v33 = vld [vmem:[%s1575_s1 + $0x3c0] sm:$0xff]  ;;  %v116_v34 = vld [vmem:[%s1575_s1 + $0x230] sm:$0xff] }
  0x22   :  { %398 = vmatpush.msrb.mxu0 %v125_v62  ;;  %344 = vmatpush.msra.mxu1 %v62_v0  ;;  %v133_v35 = vld [vmem:[%s1575_s1 + $0x2b8] sm:$0xff]  ;;  %v148_v36 = vld [vmem:[%s1575_s1 + $0x330] sm:$0xff]  ;;  %v115_v38 = vld [vmem:[%s1575_s1 + $0x228] sm:$0xff] }
  0x23   :  { %444 = vmatpush.msrb.mxu2 %v157_v63  ;;  %390 = vmatpush.msra.mxu3 %v94_v1  ;;  %v165_v37 = vld [vmem:[%s1575_s1 + $0x3b8] sm:$0xff]  ;;  %v132_v39 = vld [vmem:[%s1575_s1 + $0x2b0] sm:$0xff]  ;;  %v147_v40 = vld [vmem:[%s1575_s1 + $0x328] sm:$0xff] }
  0x24   :  { %399 = vmatpush.msrb.mxu0 %v124_v2  ;;  %421 = vmatpush.msrb.mxu1 %v141_v3  ;;  %v164_v41 = vld [vmem:[%s1575_s1 + $0x3b0] sm:$0xff]  ;;  %v114_v42 = vld [vmem:[%s1575_s1 + $0x220] sm:$0xff]  ;;  %v131_v43 = vld [vmem:[%s1575_s1 + $0x2a8] sm:$0xff] }
  0x25   :  { %445 = vmatpush.msrb.mxu2 %v156_v4  ;;  %467 = vmatpush.msrb.mxu3 %v173_v5  ;;  %v146_v44 = vld [vmem:[%s1575_s1 + $0x320] sm:$0xff]  ;;  %v163_v45 = vld [vmem:[%s1575_s1 + $0x3a8] sm:$0xff]  ;;  %v16_v46 = vld [vmem:[%s1576_s0 + $0x10] sm:$0xff] }
  0x26   :  { %400 = vmatpush.msrb.mxu0 %v123_v6  ;;  %422 = vmatpush.msrb.mxu1 %v140_v7  ;;  %v113_v47 = vld [vmem:[%s1575_s1 + $0x218] sm:$0xff]  ;;  %v130_v48 = vld [vmem:[%s1575_s1 + $0x2a0] sm:$0xff]  ;;  %v112_v53 = vld [vmem:[%s1575_s1 + $0x210] sm:$0xff] }
  0x27   :  { %446 = vmatpush.msrb.mxu2 %v155_v8  ;;  %468 = vmatpush.msrb.mxu3 %v172_v9  ;;  %v145_v49 = vld [vmem:[%s1575_s1 + $0x318] sm:$0xff]  ;;  %v162_v50 = vld [vmem:[%s1575_s1 + $0x3a0] sm:$0xff]  ;;  %v144_v55 = vld [vmem:[%s1575_s1 + $0x310] sm:$0xff] }
  0x28   :  { %401 = vmatpush.msrb.mxu0 %v122_v10  ;;  %423 = vmatpush.msrb.mxu1 %v139_v11  ;;  %v14_v51 = vld [vmem:[%s1576_s0] sm:$0xff]  ;;  %v17_v52 = vld [vmem:[%s1576_s0 + $0x18] sm:$0xff]  ;;  %v15_v57 = vld [vmem:[%s1576_s0 + $0x8] sm:$0xff] }
  0x29   :  { %447 = vmatpush.msrb.mxu2 %v154_v12  ;;  %469 = vmatpush.msrb.mxu3 %v171_v13  ;;  %v129_v54 = vld [vmem:[%s1575_s1 + $0x298] sm:$0xff]  ;;  %v111_v58 = vld [vmem:[%s1575_s1 + $0x208] sm:$0xff]  ;;  %v128_v59 = vld [vmem:[%s1575_s1 + $0x290] sm:$0xff] }
  0x2a   :  { %402 = vmatpush.msrb.mxu0 %v121_v14  ;;  %424 = vmatpush.msrb.mxu1 %v138_v15  ;;  %v161_v56 = vld [vmem:[%s1575_s1 + $0x398] sm:$0xff]  ;;  %v143_v60 = vld [vmem:[%s1575_s1 + $0x308] sm:$0xff]  ;;  %v160_v61 = vld [vmem:[%s1575_s1 + $0x390] sm:$0xff] }
  0x2b   :  { %448 = vmatpush.msrb.mxu2 %v153_v16  ;;  %470 = vmatpush.msrb.mxu3 %v170_v17  ;;  %v110_v62 = vld [vmem:[%s1575_s1 + $0x200] sm:$0xff]  ;;  %v127_v63 = vld [vmem:[%s1575_s1 + $0x288] sm:$0xff]  ;;  %v32_v2 = vld [vmem:[%s1576_s0 + $0x90] sm:$0xff] }
  0x2c   :  { %403 = vmatpush.msrb.mxu0 %v120_v18  ;;  %425 = vmatpush.msrb.mxu1 %v137_v19  ;;  %v142_v0 = vld [vmem:[%s1575_s1 + $0x300] sm:$0xff]  ;;  %v159_v1 = vld [vmem:[%s1575_s1 + $0x388] sm:$0xff]  ;;  %v189_v3 = vld [vmem:[%s1575_s1 + $0x478] sm:$0xff] }
  0x2d   :  { %449 = vmatpush.msrb.mxu2 %v152_v20  ;;  %471 = vmatpush.msrb.mxu3 %v169_v21  ;;  %v221_v4 = vld [vmem:[%s1575_s1 + $0x578] sm:$0xff]  ;;  %v126_v5 = vld [vmem:[%s1575_s1 + $0x280] sm:$0xff]  ;;  %v188_v9 = vld [vmem:[%s1575_s1 + $0x470] sm:$0xff] }
  0x2e   :  { %404 = vmatpush.msrb.mxu0 %v119_v22  ;;  %426 = vmatpush.msrb.mxu1 %v136_v23  ;;  %v158_v6 = vld [vmem:[%s1575_s1 + $0x380] sm:$0xff]  ;;  %v33_v8 = vld [vmem:[%s1576_s0 + $0x98] sm:$0xff]  ;;  %v220_v11 = vld [vmem:[%s1575_s1 + $0x570] sm:$0xff] }
  0x2f   :  { %450 = vmatpush.msrb.mxu2 %v151_v24  ;;  %472 = vmatpush.msrb.mxu3 %v168_v25  ;;  %v30_v7 = vld [vmem:[%s1576_s0 + $0x80] sm:$0xff]  ;;  %v205_v10 = vld [vmem:[%s1575_s1 + $0x4f8] sm:$0xff]  ;;  %v31_v13 = vld [vmem:[%s1576_s0 + $0x88] sm:$0xff] }
  0x30   :  { %405 = vmatpush.msrb.mxu0 %v118_v26  ;;  %427 = vmatpush.msrb.mxu1 %v135_v27  ;;  %v237_v12 = vld [vmem:[%s1575_s1 + $0x5f8] sm:$0xff]  ;;  %v187_v14 = vld [vmem:[%s1575_s1 + $0x468] sm:$0xff]  ;;  %v204_v15 = vld [vmem:[%s1575_s1 + $0x4f0] sm:$0xff] }
  0x31   :  { %451 = vmatpush.msrb.mxu2 %v150_v28  ;;  %473 = vmatpush.msrb.mxu3 %v167_v29  ;;  %v219_v16 = vld [vmem:[%s1575_s1 + $0x568] sm:$0xff]  ;;  %v236_v17 = vld [vmem:[%s1575_s1 + $0x5f0] sm:$0xff]  ;;  %v186_v18 = vld [vmem:[%s1575_s1 + $0x460] sm:$0xff] }
  0x32   :  { %406 = vmatpush.msrb.mxu0 %v117_v30  ;;  %428 = vmatpush.msrb.mxu1 %v134_v31  ;;  %v203_v19 = vld [vmem:[%s1575_s1 + $0x4e8] sm:$0xff]  ;;  %v218_v20 = vld [vmem:[%s1575_s1 + $0x560] sm:$0xff]  ;;  %v20_v22 = vld [vmem:[%s1576_s0 + $0x30] sm:$0xff] }
  0x33   :  { %452 = vmatpush.msrb.mxu2 %v149_v32  ;;  %474 = vmatpush.msrb.mxu3 %v166_v33  ;;  %v235_v21 = vld [vmem:[%s1575_s1 + $0x5e8] sm:$0xff]  ;;  %v185_v23 = vld [vmem:[%s1575_s1 + $0x458] sm:$0xff]  ;;  %v202_v24 = vld [vmem:[%s1575_s1 + $0x4e0] sm:$0xff] }
  0x34   :  { %407 = vmatpush.msrb.mxu0 %v116_v34  ;;  %429 = vmatpush.msrb.mxu1 %v133_v35  ;;  %v217_v25 = vld [vmem:[%s1575_s1 + $0x558] sm:$0xff]  ;;  %v234_v26 = vld [vmem:[%s1575_s1 + $0x5e0] sm:$0xff]  ;;  %v184_v29 = vld [vmem:[%s1575_s1 + $0x450] sm:$0xff] }
  0x35   :  { %453 = vmatpush.msrb.mxu2 %v148_v36  ;;  %475 = vmatpush.msrb.mxu3 %v165_v37  ;;  %v18_v27 = vld [vmem:[%s1576_s0 + $0x20] sm:$0xff]  ;;  %v21_v28 = vld [vmem:[%s1576_s0 + $0x38] sm:$0xff]  ;;  %v216_v31 = vld [vmem:[%s1575_s1 + $0x550] sm:$0xff] }
  0x36   :  { %408 = vmatpush.msrb.mxu0 %v115_v38  ;;  %430 = vmatpush.msrb.mxu1 %v132_v39  ;;  %v201_v30 = vld [vmem:[%s1575_s1 + $0x4d8] sm:$0xff]  ;;  %v19_v33 = vld [vmem:[%s1576_s0 + $0x28] sm:$0xff]  ;;  %v200_v35 = vld [vmem:[%s1575_s1 + $0x4d0] sm:$0xff] }
  0x37   :  { %454 = vmatpush.msrb.mxu2 %v147_v40  ;;  %476 = vmatpush.msrb.mxu3 %v164_v41  ;;  %v233_v32 = vld [vmem:[%s1575_s1 + $0x5d8] sm:$0xff]  ;;  %v183_v34 = vld [vmem:[%s1575_s1 + $0x448] sm:$0xff]  ;;  %v232_v37 = vld [vmem:[%s1575_s1 + $0x5d0] sm:$0xff] }
  0x38   :  { %409 = vmatpush.msrb.mxu0 %v114_v42  ;;  %431 = vmatpush.msrb.mxu1 %v131_v43  ;;  %v215_v36 = vld [vmem:[%s1575_s1 + $0x548] sm:$0xff]  ;;  %v182_v38 = vld [vmem:[%s1575_s1 + $0x440] sm:$0xff]  ;;  %v181_v42 = vld [vmem:[%s1575_s1 + $0x438] sm:$0xff] }
  0x39   :  { %455 = vmatpush.msrb.mxu2 %v146_v44  ;;  %477 = vmatpush.msrb.mxu3 %v163_v45  ;;  %v199_v39 = vld [vmem:[%s1575_s1 + $0x4c8] sm:$0xff]  ;;  %v214_v40 = vld [vmem:[%s1575_s1 + $0x540] sm:$0xff]  ;;  %v213_v44 = vld [vmem:[%s1575_s1 + $0x538] sm:$0xff] }
  0x3a   :  { %368 = vmatmul.f32.vlgmr.msra.gmra.mxu2 %v16_v46  ;;  %410 = vmatpush.msrb.mxu0 %v113_v47  ;;  %v231_v41 = vld [vmem:[%s1575_s1 + $0x5c8] sm:$0xff]  ;;  %v198_v43 = vld [vmem:[%s1575_s1 + $0x4c0] sm:$0xff]  ;;  %v180_v46 = vld [vmem:[%s1575_s1 + $0x430] sm:$0xff] }
  0x3b   :  { %432 = vmatpush.msrb.mxu1 %v130_v48  ;;  %456 = vmatpush.msrb.mxu2 %v145_v49  ;;  %v230_v45 = vld [vmem:[%s1575_s1 + $0x5c0] sm:$0xff]  ;;  %v197_v47 = vld [vmem:[%s1575_s1 + $0x4b8] sm:$0xff]  ;;  %v212_v48 = vld [vmem:[%s1575_s1 + $0x530] sm:$0xff] }
  0x3c   :  { %478 = vmatpush.msrb.mxu3 %v162_v50  ;;  %322 = vmatmul.f32.vlgmr.msra.gmra.mxu0 %v14_v51  ;;  %v229_v49 = vld [vmem:[%s1575_s1 + $0x5b8] sm:$0xff]  ;;  %v179_v50 = vld [vmem:[%s1575_s1 + $0x428] sm:$0xff]  ;;  %v196_v51 = vld [vmem:[%s1575_s1 + $0x4b0] sm:$0xff] }
  0x3d   :  { %391 = vmatmul.f32.vlgmr.msra.gmra.mxu3 %v17_v52  ;;  %411 = vmatpush.msrb.mxu0 %v112_v53  ;;  %v211_v52 = vld [vmem:[%s1575_s1 + $0x528] sm:$0xff]  ;;  %v228_v53 = vld [vmem:[%s1575_s1 + $0x5b0] sm:$0xff] }
  0x3e   :  { %433 = vmatpush.msrb.mxu1 %v129_v54  ;;  %457 = vmatpush.msrb.mxu2 %v144_v55  ;;  %v178_v54 = vld [vmem:[%s1575_s1 + $0x420] sm:$0xff]  ;;  %v195_v55 = vld [vmem:[%s1575_s1 + $0x4a8] sm:$0xff] }
  0x3f   :  { %479 = vmatpush.msrb.mxu3 %v161_v56  ;;  %345 = vmatmul.f32.vlgmr.msra.gmra.mxu1 %v15_v57  ;;  %v210_v56 = vld [vmem:[%s1575_s1 + $0x520] sm:$0xff]  ;;  %v227_v57 = vld [vmem:[%s1575_s1 + $0x5a8] sm:$0xff] }
  0x40   :  { %412 = vmatpush.msrb.mxu0 %v111_v58  ;;  %434 = vmatpush.msrb.mxu1 %v128_v59  ;;  %v34_v58 = vld [vmem:[%s1576_s0 + $0xa0] sm:$0xff]  ;;  %v36_v59 = vld [vmem:[%s1576_s0 + $0xb0] sm:$0xff] }
  0x41   :  { %458 = vmatpush.msrb.mxu2 %v143_v60  ;;  %480 = vmatpush.msrb.mxu3 %v160_v61  ;;  %v177_v60 = vld [vmem:[%s1575_s1 + $0x418] sm:$0xff]  ;;  %v194_v61 = vld [vmem:[%s1575_s1 + $0x4a0] sm:$0xff] }
  0x42   :  { %413 = vmatpush.msrb.mxu0 %v110_v62  ;;  %435 = vmatpush.msrb.mxu1 %v127_v63  ;;  %v209_v62 = vld [vmem:[%s1575_s1 + $0x518] sm:$0xff]  ;;  %v226_v63 = vld [vmem:[%s1575_s1 + $0x5a0] sm:$0xff] }
  0x43   :  { %459 = vmatpush.msrb.mxu2 %v142_v0  ;;  %481 = vmatpush.msrb.mxu3 %v159_v1  ;;  %v35_v0 = vld [vmem:[%s1576_s0 + $0xa8] sm:$0xff]  ;;  %v37_v1 = vld [vmem:[%s1576_s0 + $0xb8] sm:$0xff] }
  0x44   :  { %371 = vmatmul.f32.gmra.mxu2 %v32_v2  ;;  %490 = vmatpush.msra.mxu0 %v189_v3  ;;  %v176_v2 = vld [vmem:[%s1575_s1 + $0x410] sm:$0xff]  ;;  %v193_v3 = vld [vmem:[%s1575_s1 + $0x498] sm:$0xff] }
  0x45   :  { %536 = vmatpush.msra.mxu2 %v221_v4  ;;  %436 = vmatpush.msrb.mxu1 %v126_v5  ;;  %v208_v4 = vld [vmem:[%s1575_s1 + $0x510] sm:$0xff]  ;;  %v225_v5 = vld [vmem:[%s1575_s1 + $0x598] sm:$0xff] }
  0x46   :  { %482 = vmatpush.msrb.mxu3 %v158_v6  ;;  %325 = vmatmul.f32.gmra.mxu0 %v30_v7  ;;  %v175_v6 = vld [vmem:[%s1575_s1 + $0x408] sm:$0xff]  ;;  %v192_v7 = vld [vmem:[%s1575_s1 + $0x490] sm:$0xff] }
  0x47   :  { %394 = vmatmul.f32.gmra.mxu3 %v33_v8  ;;  %491 = vmatpush.msra.mxu0 %v188_v9  ;;  %v207_v8 = vld [vmem:[%s1575_s1 + $0x508] sm:$0xff]  ;;  %v224_v9 = vld [vmem:[%s1575_s1 + $0x590] sm:$0xff] }
  0x48   :  { %513 = vmatpush.msra.mxu1 %v205_v10  ;;  %537 = vmatpush.msra.mxu2 %v220_v11  ;;  %v174_v10 = vld [vmem:[%s1575_s1 + $0x400] sm:$0xff]  ;;  %v191_v11 = vld [vmem:[%s1575_s1 + $0x488] sm:$0xff] }
  0x49   :  { %559 = vmatpush.msra.mxu3 %v237_v12  ;;  %348 = vmatmul.f32.gmra.mxu1 %v31_v13  ;;  %v206_v12 = vld [vmem:[%s1575_s1 + $0x500] sm:$0xff]  ;;  %v223_v13 = vld [vmem:[%s1575_s1 + $0x588] sm:$0xff] }
  0x4a   :  { %492 = vmatpush.msra.mxu0 %v187_v14  ;;  %514 = vmatpush.msra.mxu1 %v204_v15  ;;  %v22_v14 = vld [vmem:[%s1576_s0 + $0x40] sm:$0xff]  ;;  %v24_v15 = vld [vmem:[%s1576_s0 + $0x50] sm:$0xff] }
  0x4b   :  { %538 = vmatpush.msra.mxu2 %v219_v16  ;;  %560 = vmatpush.msra.mxu3 %v236_v17  ;;  %v253_v16 = vld [vmem:[%s1575_s1 + $0x678] sm:$0xff] }
  0x4c   :  { %493 = vmatpush.msra.mxu0 %v186_v18  ;;  %515 = vmatpush.msra.mxu1 %v203_v19  ;;  %v285_v17 = vld [vmem:[%s1575_s1 + $0x778] sm:$0xff]  ;;  %v190_v18 = vld [vmem:[%s1575_s1 + $0x480] sm:$0xff] }
  0x4d   :  { %539 = vmatpush.msra.mxu2 %v218_v20  ;;  %561 = vmatpush.msra.mxu3 %v235_v21  ;;  %v222_v19 = vld [vmem:[%s1575_s1 + $0x580] sm:$0xff]  ;;  %v23_v20 = vld [vmem:[%s1576_s0 + $0x48] sm:$0xff]  ;;  %v25_v21 = vld [vmem:[%s1576_s0 + $0x58] sm:$0xff] }
  0x4e   :  { %460 = vmatmul.f32.vlgmr.msrb.gmra.mxu2 %v20_v22  ;;  %494 = vmatpush.msra.mxu0 %v185_v23  ;;  %v252_v22 = vld [vmem:[%s1575_s1 + $0x670] sm:$0xff]  ;;  %v269_v23 = vld [vmem:[%s1575_s1 + $0x6f8] sm:$0xff] }
  0x4f   :  { %516 = vmatpush.msra.mxu1 %v202_v24  ;;  %540 = vmatpush.msra.mxu2 %v217_v25  ;;  %v284_v24 = vld [vmem:[%s1575_s1 + $0x770] sm:$0xff]  ;;  %v301_v25 = vld [vmem:[%s1575_s1 + $0x7f8] sm:$0xff] }
  0x50   :  { %562 = vmatpush.msra.mxu3 %v234_v26  ;;  %414 = vmatmul.f32.vlgmr.msrb.gmra.mxu0 %v18_v27  ;;  %v251_v26 = vld [vmem:[%s1575_s1 + $0x668] sm:$0xff]  ;;  %v268_v27 = vld [vmem:[%s1575_s1 + $0x6f0] sm:$0xff] }
  0x51   :  { %483 = vmatmul.f32.vlgmr.msrb.gmra.mxu3 %v21_v28  ;;  %495 = vmatpush.msra.mxu0 %v184_v29  ;;  %v283_v28 = vld [vmem:[%s1575_s1 + $0x768] sm:$0xff]  ;;  %v300_v29 = vld [vmem:[%s1575_s1 + $0x7f0] sm:$0xff] }
  0x52   :  { %517 = vmatpush.msra.mxu1 %v201_v30  ;;  %541 = vmatpush.msra.mxu2 %v216_v31  ;;  %v250_v30 = vld [vmem:[%s1575_s1 + $0x660] sm:$0xff]  ;;  %v267_v31 = vld [vmem:[%s1575_s1 + $0x6e8] sm:$0xff] }
  0x53   :  { %563 = vmatpush.msra.mxu3 %v233_v32  ;;  %437 = vmatmul.f32.vlgmr.msrb.gmra.mxu1 %v19_v33  ;;  %v282_v32 = vld [vmem:[%s1575_s1 + $0x760] sm:$0xff]  ;;  %v299_v33 = vld [vmem:[%s1575_s1 + $0x7e8] sm:$0xff] }
  0x54   :  { %496 = vmatpush.msra.mxu0 %v183_v34  ;;  %518 = vmatpush.msra.mxu1 %v200_v35  ;;  %v40_v34 = vld [vmem:[%s1576_s0 + $0xd0] sm:$0xff]  ;;  %v249_v35 = vld [vmem:[%s1575_s1 + $0x658] sm:$0xff] }
  0x55   :  { %542 = vmatpush.msra.mxu2 %v215_v36  ;;  %564 = vmatpush.msra.mxu3 %v232_v37  ;;  %v266_v36 = vld [vmem:[%s1575_s1 + $0x6e0] sm:$0xff]  ;;  %v281_v37 = vld [vmem:[%s1575_s1 + $0x758] sm:$0xff] }
  0x56   :  { %497 = vmatpush.msra.mxu0 %v182_v38  ;;  %519 = vmatpush.msra.mxu1 %v199_v39  ;;  %v298_v38 = vld [vmem:[%s1575_s1 + $0x7e0] sm:$0xff] }
  0x57   :  { %543 = vmatpush.msra.mxu2 %v214_v40  ;;  %565 = vmatpush.msra.mxu3 %v231_v41  ;;  %v38_v39 = vld [vmem:[%s1576_s0 + $0xc0] sm:$0xff]  ;;  %v41_v40 = vld [vmem:[%s1576_s0 + $0xd8] sm:$0xff]  ;;  %v248_v41 = vld [vmem:[%s1575_s1 + $0x650] sm:$0xff] }
  0x58   :  { %498 = vmatpush.msra.mxu0 %v181_v42  ;;  %520 = vmatpush.msra.mxu1 %v198_v43  ;;  %v265_v42 = vld [vmem:[%s1575_s1 + $0x6d8] sm:$0xff]  ;;  %v280_v43 = vld [vmem:[%s1575_s1 + $0x750] sm:$0xff] }
  0x59   :  { %544 = vmatpush.msra.mxu2 %v213_v44  ;;  %566 = vmatpush.msra.mxu3 %v230_v45  ;;  %v297_v44 = vld [vmem:[%s1575_s1 + $0x7d8] sm:$0xff]  ;;  %v39_v45 = vld [vmem:[%s1576_s0 + $0xc8] sm:$0xff] }
  0x5a   :  { %499 = vmatpush.msra.mxu0 %v180_v46  ;;  %521 = vmatpush.msra.mxu1 %v197_v47  ;;  %v247_v46 = vld [vmem:[%s1575_s1 + $0x648] sm:$0xff]  ;;  %v264_v47 = vld [vmem:[%s1575_s1 + $0x6d0] sm:$0xff] }
  0x5b   :  { %545 = vmatpush.msra.mxu2 %v212_v48  ;;  %567 = vmatpush.msra.mxu3 %v229_v49  ;;  %v279_v48 = vld [vmem:[%s1575_s1 + $0x748] sm:$0xff]  ;;  %v296_v49 = vld [vmem:[%s1575_s1 + $0x7d0] sm:$0xff] }
  0x5c   :  { %500 = vmatpush.msra.mxu0 %v179_v50  ;;  %522 = vmatpush.msra.mxu1 %v196_v51  ;;  %v246_v50 = vld [vmem:[%s1575_s1 + $0x640] sm:$0xff]  ;;  %v263_v51 = vld [vmem:[%s1575_s1 + $0x6c8] sm:$0xff] }
  0x5d   :  { %546 = vmatpush.msra.mxu2 %v211_v52  ;;  %568 = vmatpush.msra.mxu3 %v228_v53  ;;  %v278_v52 = vld [vmem:[%s1575_s1 + $0x740] sm:$0xff]  ;;  %v295_v53 = vld [vmem:[%s1575_s1 + $0x7c8] sm:$0xff] }
  0x5e   :  { %501 = vmatpush.msra.mxu0 %v178_v54  ;;  %523 = vmatpush.msra.mxu1 %v195_v55  ;;  %v245_v54 = vld [vmem:[%s1575_s1 + $0x638] sm:$0xff]  ;;  %v262_v55 = vld [vmem:[%s1575_s1 + $0x6c0] sm:$0xff] }
  0x5f   :  { %547 = vmatpush.msra.mxu2 %v210_v56  ;;  %569 = vmatpush.msra.mxu3 %v227_v57  ;;  %v277_v56 = vld [vmem:[%s1575_s1 + $0x738] sm:$0xff]  ;;  %v294_v57 = vld [vmem:[%s1575_s1 + $0x7c0] sm:$0xff] }
  0x60   :  { %417 = vmatmul.f32.gmra.mxu0 %v34_v58  ;;  %463 = vmatmul.f32.gmra.mxu2 %v36_v59  ;;  %v244_v58 = vld [vmem:[%s1575_s1 + $0x630] sm:$0xff]  ;;  %v261_v59 = vld [vmem:[%s1575_s1 + $0x6b8] sm:$0xff] }
  0x61   :  { %502 = vmatpush.msra.mxu0 %v177_v60  ;;  %524 = vmatpush.msra.mxu1 %v194_v61  ;;  %v276_v60 = vld [vmem:[%s1575_s1 + $0x730] sm:$0xff]  ;;  %v293_v61 = vld [vmem:[%s1575_s1 + $0x7b8] sm:$0xff] }
  0x62   :  { %548 = vmatpush.msra.mxu2 %v209_v62  ;;  %570 = vmatpush.msra.mxu3 %v226_v63  ;;  %v243_v62 = vld [vmem:[%s1575_s1 + $0x628] sm:$0xff]  ;;  %v260_v63 = vld [vmem:[%s1575_s1 + $0x6b0] sm:$0xff] }
  0x63   :  { %440 = vmatmul.f32.gmra.mxu1 %v35_v0  ;;  %486 = vmatmul.f32.gmra.mxu3 %v37_v1  ;;  %v275_v0 = vld [vmem:[%s1575_s1 + $0x728] sm:$0xff]  ;;  %v292_v1 = vld [vmem:[%s1575_s1 + $0x7b0] sm:$0xff] }
  0x64   :  { %503 = vmatpush.msra.mxu0 %v176_v2  ;;  %525 = vmatpush.msra.mxu1 %v193_v3  ;;  %v242_v2 = vld [vmem:[%s1575_s1 + $0x620] sm:$0xff]  ;;  %v259_v3 = vld [vmem:[%s1575_s1 + $0x6a8] sm:$0xff] }
  0x65   :  { %549 = vmatpush.msra.mxu2 %v208_v4  ;;  %571 = vmatpush.msra.mxu3 %v225_v5  ;;  %v274_v4 = vld [vmem:[%s1575_s1 + $0x720] sm:$0xff]  ;;  %v291_v5 = vld [vmem:[%s1575_s1 + $0x7a8] sm:$0xff] }
  0x66   :  { %504 = vmatpush.msra.mxu0 %v175_v6  ;;  %526 = vmatpush.msra.mxu1 %v192_v7  ;;  %v241_v6 = vld [vmem:[%s1575_s1 + $0x618] sm:$0xff]  ;;  %v258_v7 = vld [vmem:[%s1575_s1 + $0x6a0] sm:$0xff] }
  0x67   :  { %550 = vmatpush.msra.mxu2 %v207_v8  ;;  %572 = vmatpush.msra.mxu3 %v224_v9  ;;  %v273_v8 = vld [vmem:[%s1575_s1 + $0x718] sm:$0xff]  ;;  %v290_v9 = vld [vmem:[%s1575_s1 + $0x7a0] sm:$0xff] }
  0x68   :  { %505 = vmatpush.msra.mxu0 %v174_v10  ;;  %527 = vmatpush.msra.mxu1 %v191_v11  ;;  %v240_v10 = vld [vmem:[%s1575_s1 + $0x610] sm:$0xff]  ;;  %v257_v11 = vld [vmem:[%s1575_s1 + $0x698] sm:$0xff] }
  0x69   :  { %551 = vmatpush.msra.mxu2 %v206_v12  ;;  %573 = vmatpush.msra.mxu3 %v223_v13  ;;  %v272_v12 = vld [vmem:[%s1575_s1 + $0x710] sm:$0xff]  ;;  %v289_v13 = vld [vmem:[%s1575_s1 + $0x798] sm:$0xff] }
  0x6a   :  { %506 = vmatmul.f32.vlgmr.msra.gmra.mxu0 %v22_v14  ;;  %552 = vmatmul.f32.vlgmr.msra.gmra.mxu2 %v24_v15  ;;  %v239_v14 = vld [vmem:[%s1575_s1 + $0x608] sm:$0xff]  ;;  %v256_v15 = vld [vmem:[%s1575_s1 + $0x690] sm:$0xff] }
  0x6b   :  { %582 = vmatpush.msrb.mxu0 %v253_v16  ;;  %628 = vmatpush.msrb.mxu2 %v285_v17  ;;  %v271_v16 = vld [vmem:[%s1575_s1 + $0x708] sm:$0xff]  ;;  %v288_v17 = vld [vmem:[%s1575_s1 + $0x790] sm:$0xff] }
  0x6c   :  { %528 = vmatpush.msra.mxu1 %v190_v18  ;;  %574 = vmatpush.msra.mxu3 %v222_v19  ;;  %v238_v18 = vld [vmem:[%s1575_s1 + $0x600] sm:$0xff]  ;;  %v255_v19 = vld [vmem:[%s1575_s1 + $0x688] sm:$0xff] }
  0x6d   :  { %529 = vmatmul.f32.vlgmr.msra.gmra.mxu1 %v23_v20  ;;  %575 = vmatmul.f32.vlgmr.msra.gmra.mxu3 %v25_v21  ;;  %v270_v20 = vld [vmem:[%s1575_s1 + $0x700] sm:$0xff]  ;;  %v287_v21 = vld [vmem:[%s1575_s1 + $0x788] sm:$0xff] }
  0x6e   :  { %583 = vmatpush.msrb.mxu0 %v252_v22  ;;  %605 = vmatpush.msrb.mxu1 %v269_v23  ;;  %v26_v22 = vld [vmem:[%s1576_s0 + $0x60] sm:$0xff]  ;;  %v28_v23 = vld [vmem:[%s1576_s0 + $0x70] sm:$0xff] }
  0x6f   :  { %629 = vmatpush.msrb.mxu2 %v284_v24  ;;  %651 = vmatpush.msrb.mxu3 %v301_v25  ;;  %v254_v24 = vld [vmem:[%s1575_s1 + $0x680] sm:$0xff] }
  0x70   :  { %584 = vmatpush.msrb.mxu0 %v251_v26  ;;  %606 = vmatpush.msrb.mxu1 %v268_v27  ;;  %v286_v25 = vld [vmem:[%s1575_s1 + $0x780] sm:$0xff]  ;;  %v27_v26 = vld [vmem:[%s1576_s0 + $0x68] sm:$0xff]  ;;  %v29_v27 = vld [vmem:[%s1576_s0 + $0x78] sm:$0xff] }
  0x71   :  { %630 = vmatpush.msrb.mxu2 %v283_v28  ;;  %652 = vmatpush.msrb.mxu3 %v300_v29  ;;  %v42_v28 = vld [vmem:[%s1576_s0 + $0xe0] sm:$0xff]  ;;  %v44_v29 = vld [vmem:[%s1576_s0 + $0xf0] sm:$0xff] }
  0x72   :  { %585 = vmatpush.msrb.mxu0 %v250_v30  ;;  %607 = vmatpush.msrb.mxu1 %v267_v31  ;;  %v43_v30 = vld [vmem:[%s1576_s0 + $0xe8] sm:$0xff]  ;;  %v45_v31 = vld [vmem:[%s1576_s0 + $0xf8] sm:$0xff] }
  0x73   :  { %631 = vmatpush.msrb.mxu2 %v282_v32  ;;  %653 = vmatpush.msrb.mxu3 %v299_v33 }
  0x74   :  { %555 = vmatmul.f32.gmra.mxu2 %v40_v34  ;;  %586 = vmatpush.msrb.mxu0 %v249_v35 }
  0x75   :  { %608 = vmatpush.msrb.mxu1 %v266_v36  ;;  %632 = vmatpush.msrb.mxu2 %v281_v37  ;;  %v681_v37 = vld [vmem:[%s1577_s2] ss:$0 sm:$0xff] }
  0x76   :  { %654 = vmatpush.msrb.mxu3 %v298_v38  ;;  %509 = vmatmul.f32.gmra.mxu0 %v38_v39 }
  0x77   :  { %578 = vmatmul.f32.gmra.mxu3 %v41_v40  ;;  %587 = vmatpush.msrb.mxu0 %v248_v41 }
  0x78   :  { %609 = vmatpush.msrb.mxu1 %v265_v42  ;;  %633 = vmatpush.msrb.mxu2 %v280_v43 }
  0x79   :  { %655 = vmatpush.msrb.mxu3 %v297_v44  ;;  %532 = vmatmul.f32.gmra.mxu1 %v39_v45 }
  0x7a   :  { %588 = vmatpush.msrb.mxu0 %v247_v46  ;;  %610 = vmatpush.msrb.mxu1 %v264_v47 }
  0x7b   :  { %634 = vmatpush.msrb.mxu2 %v279_v48  ;;  %656 = vmatpush.msrb.mxu3 %v296_v49 }
  0x7c   :  { %589 = vmatpush.msrb.mxu0 %v246_v50  ;;  %611 = vmatpush.msrb.mxu1 %v263_v51 }
  0x7d   :  { %635 = vmatpush.msrb.mxu2 %v278_v52  ;;  %657 = vmatpush.msrb.mxu3 %v295_v53 }
  0x7e   :  { %590 = vmatpush.msrb.mxu0 %v245_v54  ;;  %612 = vmatpush.msrb.mxu1 %v262_v55 }
  0x7f   :  { %636 = vmatpush.msrb.mxu2 %v277_v56  ;;  %658 = vmatpush.msrb.mxu3 %v294_v57 }
  0x80   :  { %591 = vmatpush.msrb.mxu0 %v244_v58  ;;  %613 = vmatpush.msrb.mxu1 %v261_v59 }
  0x81   :  { %637 = vmatpush.msrb.mxu2 %v276_v60  ;;  %659 = vmatpush.msrb.mxu3 %v293_v61 }
  0x82   :  { %592 = vmatpush.msrb.mxu0 %v243_v62  ;;  %614 = vmatpush.msrb.mxu1 %v260_v63 }
  0x83   :  { %638 = vmatpush.msrb.mxu2 %v275_v0  ;;  %660 = vmatpush.msrb.mxu3 %v292_v1 }
  0x84   :  { %593 = vmatpush.msrb.mxu0 %v242_v2  ;;  %615 = vmatpush.msrb.mxu1 %v259_v3 }
  0x85   :  { %639 = vmatpush.msrb.mxu2 %v274_v4  ;;  %661 = vmatpush.msrb.mxu3 %v291_v5 }
  0x86   :  { %594 = vmatpush.msrb.mxu0 %v241_v6  ;;  %616 = vmatpush.msrb.mxu1 %v258_v7 }
  0x87   :  { %640 = vmatpush.msrb.mxu2 %v273_v8  ;;  %662 = vmatpush.msrb.mxu3 %v290_v9 }
  0x88   :  { %595 = vmatpush.msrb.mxu0 %v240_v10  ;;  %617 = vmatpush.msrb.mxu1 %v257_v11 }
  0x89   :  { %641 = vmatpush.msrb.mxu2 %v272_v12  ;;  %663 = vmatpush.msrb.mxu3 %v289_v13 }
  0x8a   :  { %596 = vmatpush.msrb.mxu0 %v239_v14  ;;  %618 = vmatpush.msrb.mxu1 %v256_v15 }
  0x8b   :  { %642 = vmatpush.msrb.mxu2 %v271_v16  ;;  %664 = vmatpush.msrb.mxu3 %v288_v17 }
  0x8c   :  { %597 = vmatpush.msrb.mxu0 %v238_v18  ;;  %619 = vmatpush.msrb.mxu1 %v255_v19 }
  0x8d   :  { %643 = vmatpush.msrb.mxu2 %v270_v20  ;;  %665 = vmatpush.msrb.mxu3 %v287_v21 }
  0x8e   :  { %598 = vmatmul.f32.vlgmr.msrb.gmra.mxu0 %v26_v22  ;;  %644 = vmatmul.f32.vlgmr.msrb.gmra.mxu2 %v28_v23 }
  0x8f   :  { %620 = vmatpush.msrb.mxu1 %v254_v24  ;;  %666 = vmatpush.msrb.mxu3 %v286_v25 }
  0x90   :  { %621 = vmatmul.f32.vlgmr.msrb.gmra.mxu1 %v27_v26  ;;  %667 = vmatmul.f32.vlgmr.msrb.gmra.mxu3 %v29_v27 }
  0x96   :  { %601 = vmatmul.f32.gmra.mxu0 %v42_v28  ;;  %647 = vmatmul.f32.gmra.mxu2 %v44_v29 }
  0x98   :  { %624 = vmatmul.f32.gmra.mxu1 %v43_v30  ;;  %670 = vmatmul.f32.gmra.mxu3 %v45_v31 }
  0xb9   :  { %v323_v32 = vpop.f32.mrf.mxu0 }
  0xba   :  { %v324_v39 = vadd.f32 %v681_v37, %v323_v32 }
  0xbc   :  { %v346_v33 = vpop.f32.mrf.mxu1 }
  0xbd   :  { %v369_v34 = vpop.f32.mrf.mxu2  ;;  %v347_v42 = vadd.f32 %v346_v33, %v324_v39 }
  0xbf   :  { %v370_v46 = vadd.f32 %v369_v34, %v347_v42 }
  0xc0   :  { %v392_v35 = vpop.f32.mrf.mxu3 }
  0xc1   :  { %v393_v49 = vadd.f32 %v392_v35, %v370_v46 }
  0xc3   :  { %v326_v36 = vpop.f32.mrf.mxu0 }
  0xc4   :  { %v327_v43 = vadd.f32 %v681_v37, %v326_v36 }
  0xc6   :  { %v349_v38 = vpop.f32.mrf.mxu1 }
  0xc7   :  { %v372_v40 = vpop.f32.mrf.mxu2  ;;  %v350_v47 = vadd.f32 %v349_v38, %v327_v43 }
  0xc9   :  { %v373_v50 = vadd.f32 %v372_v40, %v350_v47 }
  0xca   :  { %v395_v41 = vpop.f32.mrf.mxu3 }
  0xcb   :  { %v396_v54 = vadd.f32 %v395_v41, %v373_v50 }
  0xcd   :  { %v415_v44 = vpop.f32.mrf.mxu0 }
  0xce   :  { %v416_v55 = vadd.f32 %v415_v44, %v393_v49 }
  0xd0   :  { %v438_v45 = vpop.f32.mrf.mxu1 }
  0xd1   :  { %v461_v48 = vpop.f32.mrf.mxu2  ;;  %v439_v57 = vadd.f32 %v438_v45, %v416_v55 }
  0xd3   :  { %v462_v61 = vadd.f32 %v461_v48, %v439_v57 }
  0xd4   :  { %v484_v51 = vpop.f32.mrf.mxu3 }
  0xd5   :  { %v485_v0 = vadd.f32 %v484_v51, %v462_v61 }
  0xdd   :  { %v418_v52 = vpop.f32.mrf.mxu0 }
  0xde   :  { %v419_v58 = vadd.f32 %v418_v52, %v396_v54 }
  0xe0   :  { %v441_v53 = vpop.f32.mrf.mxu1 }
  0xe1   :  { %v442_v62 = vadd.f32 %v441_v53, %v419_v58 }
  0xe3   :  { %v464_v56 = vpop.f32.mrf.mxu2 }
  0xe4   :  { %v465_v1 = vadd.f32 %v464_v56, %v442_v62 }
  0xe6   :  { %v487_v59 = vpop.f32.mrf.mxu3 }
  0xe7   :  { %v507_v60 = vpop.f32.mrf.mxu0  ;;  %v488_v5 = vadd.f32 %v487_v59, %v465_v1 }
  0xe8   :  { %v508_v3 = vadd.f32 %v507_v60, %v485_v0 }
  0xea   :  { %v530_v63 = vpop.f32.mrf.mxu1 }
  0xeb   :  { %v531_v7 = vadd.f32 %v530_v63, %v508_v3 }
  0xed   :  { %v553_v2 = vpop.f32.mrf.mxu2 }
  0xee   :  { %v554_v9 = vadd.f32 %v553_v2, %v531_v7 }
  0xf0   :  { %v576_v4 = vpop.f32.mrf.mxu3 }
  0xf1   :  { %v577_v12 = vadd.f32 %v576_v4, %v554_v9 }
  0xf3   :  { %v510_v6 = vpop.f32.mrf.mxu0 }
  0xf4   :  { %v511_v10 = vadd.f32 %v510_v6, %v488_v5 }
  0xf6   :  { %v533_v8 = vpop.f32.mrf.mxu1 }
  0xf7   :  { %v556_v11 = vpop.f32.mrf.mxu2  ;;  %v534_v13 = vadd.f32 %v533_v8, %v511_v10 }
  0xf9   :  { %v557_v18 = vadd.f32 %v556_v11, %v534_v13 }
  0xfa   :  { %v579_v14 = vpop.f32.mrf.mxu3 }
  0xfb   :  { %v580_v21 = vadd.f32 %v579_v14, %v557_v18 }
 0x10b   :  { %v599_v15 = vpop.f32.mrf.mxu0 }
 0x10c   :  { %v600_v16 = vadd.f32 %v599_v15, %v577_v12 }
 0x10d   :  { %v622_v17 = vpop.f32.mrf.mxu1 }
 0x10e   :  { %v623_v19 = vadd.f32 %v622_v17, %v600_v16 }
 0x111   :  { %v645_v20 = vpop.f32.mrf.mxu2 }
 0x112   :  { %v646_v22 = vadd.f32 %v645_v20, %v623_v19 }
 0x113   :  { %v602_v23 = vpop.f32.mrf.mxu0  ;;  %v668_v24 = vpop.f32.mrf.mxu3 }
 0x114   :  { %v603_v25 = vadd.f32 %v602_v23, %v580_v21  ;;  %v669_v26 = vadd.f32 %v668_v24, %v646_v22 }
 0x115   :  { %v625_v27 = vpop.f32.mrf.mxu1 }
 0x116   :  { %675 = vst.msk [vmem:[%s1578_s3] sm:$0xff] %vm674_vm0, %v669_v26  ;;  %v626_v28 = vadd.f32 %v625_v27, %v603_v25 }
 0x119   :  { %v648_v29 = vpop.f32.mrf.mxu2 }
 0x11a   :  { %v649_v30 = vadd.f32 %v648_v29, %v626_v28 }
 0x11b   :  { %v671_v31 = vpop.f32.mrf.mxu3 }
 0x11c   :  { %v672_v32 = vadd.f32 %v671_v31, %v649_v30 }
 0x11e   :  { %676 = vst.msk [vmem:[%s1578_s3 + $0x8] sm:$0xff] %vm674_vm0, %v672_v32 }

// kernel: decoder_forward.9
= control target key start
LH: loop header
LB: loop body
LE: loop exit
PB: predicated region body
PF: predicated region fallthrough
CT: control target
= control target key end

     0   :  { %s431_s12 = smov 0   ;;  %s433_s13 = smov 0   ;;  %s476_s0 = inlined_call_operand.vmem [shape: f32[56,32], index: 0, kind: input, shape index: {}]   ;;  %s477_s1 = inlined_call_operand.vmem [shape: f32[32,128], index: 1, kind: input, shape index: {}]   ;;  %s478_s2 = inlined_call_operand.vmem [shape: f32[1,128], index: 2, kind: input, shape index: {}]   ;;  %s479_s3 = inlined_call_operand.vmem [shape: f32[56,128], index: 3, kind: output, shape index: {}]  }
   0x1   :  { %s435_s14 = smov 0  }
   0x2 LB: > { %s25_s15 = sadd.s32 1, %s405_s13  ;;  %p356_p0 = scmp.ge.s32.totalorder %s409_s14, 1  ;;  %s409_s14 = sphi %s435_s14, %s13_s14   ;;  %s405_s13 = sphi %s433_s13, %s481_s13   ;;  %s401_s12 = sphi %s431_s12, %s480_s12  }
   0x3   : > { %p27_p1 = scmp.ge.s32.totalorder %s25_s15, 7  ;;  %p167_p2 = scmp.lt.s32.totalorder %s409_s14, 8 }
   0x5   : > { %s483_s15 = smov (%p27_p1, %s25_s15), 0  ;;  %p168_p3 = pnand %p356_p0, %p167_p2 }
   0x6   : > { %p199_p4 = scmp.lt.s32.totalorder (!%p168_p3), %s401_s12, 6 }
   0x7   : > { %171 = sbr.rel (%p168_p3) target bundleno = 149 (0x95), region = 32 }
   0xc   : > { %v221_v0 = vld [vmem:[%s477_s1 + $0x18] sm:$0xff]  ;;  %v220_v1 = vld [vmem:[%s477_s1 + $0x10] sm:$0xff]  ;;  %v219_v2 = vld [vmem:[%s477_s1 + $0x8] sm:$0xff]  ;;  %s485_s12 = smov (!%p199_p4, %s401_s12), 6  ;;  %vm226_vm0 = vcmask 261120  }
   0xd   : > { %242 = vmatpush.msra.mxu0 %v221_v0  ;;  %v218_v3 = vld [vmem:[%s477_s1] sm:$0xff]  ;;  %s357_s24 = sshll.u32 %s485_s12, 3 }
   0xe   : > { %s202_s27 = scalar_lea.vmem %s476_s0, %s357_s24  ;;  %v386_v5 = vld [vmem:[%s478_s2] ss:$0 sm:$0xff]  ;;  %s216_s5 = scalar_lea.vmem %s479_s3, %s357_s24 }
   0xf   : > { %243 = vmatpush.msra.mxu0 %v220_v1  ;;  %v217_v4 = vld [vmem:[%s202_s27] sm:$0xff] }
  0x11   : > { %244 = vmatpush.msra.mxu0 %v219_v2 }
  0x13   : > { %245 = vmatpush.msra.mxu0 %v218_v3 }
  0x14   : > { %359 = vmatmul.msk.f32.vlgmr.msra.gmra.mxu0 %vm226_vm0, %v217_v4 }
  0x91   : > { %v247_v6 = vpop.f32.mrf.mxu0 }
  0x92   : > { %v248_v7 = vadd.f32 %v386_v5, %v247_v6 }
  0x94   : > { %250 = vst [vmem:[%s216_s5] sm:$0xff] %v248_v7 }
  0x95 PF: > { %s13_s14 = sadd.s32 1, %s409_s14   ;;  %s480_s12 = smov %s405_s13 }
  0x96   : > { %p10_p5 = scmp.ge.s32.totalorder %s13_s14, 9   ;;  %s481_s13 = smov %s483_s15 }
  0x98   :  { %12 = sbr.rel (!%p10_p5) target bundleno = 2 (0x2), region = 68 }

// kernel: decoder_forward.7
= control target key start
LH: loop header
LB: loop body
LE: loop exit
PB: predicated region body
PF: predicated region fallthrough
CT: control target
= control target key end

     0   :  { %s429_s12 = smov 0   ;;  %s431_s13 = smov 0   ;;  %s464_s0 = inlined_call_operand.vmem [shape: f32[56,16], index: 0, kind: input, shape index: {}]   ;;  %s465_s1 = inlined_call_operand.vmem [shape: f32[16,128], index: 1, kind: input, shape index: {}]   ;;  %s466_s2 = inlined_call_operand.vmem [shape: f32[1,128], index: 2, kind: input, shape index: {}]   ;;  %s467_s3 = inlined_call_operand.vmem [shape: f32[56,128], index: 3, kind: output, shape index: {}]  }
   0x1   :  { %s433_s14 = smov 0  }
   0x2 LB: > { %s25_s15 = sadd.s32 1, %s403_s13  ;;  %p354_p0 = scmp.ge.s32.totalorder %s407_s14, 1  ;;  %s407_s14 = sphi %s433_s14, %s13_s14   ;;  %s403_s13 = sphi %s431_s13, %s469_s13   ;;  %s399_s12 = sphi %s429_s12, %s468_s12  }
   0x3   : > { %p27_p1 = scmp.ge.s32.totalorder %s25_s15, 7  ;;  %p167_p2 = scmp.lt.s32.totalorder %s407_s14, 8 }
   0x5   : > { %s471_s15 = smov (%p27_p1, %s25_s15), 0  ;;  %p168_p3 = pnand %p354_p0, %p167_p2 }
   0x6   : > { %p199_p4 = scmp.lt.s32.totalorder (!%p168_p3), %s399_s12, 6 }
   0x7   : > { %171 = sbr.rel (%p168_p3) target bundleno = 145 (0x91), region = 32 }
   0xc   : > { %v219_v0 = vld [vmem:[%s465_s1 + $0x8] sm:$0xff]  ;;  %v218_v1 = vld [vmem:[%s465_s1] sm:$0xff]  ;;  %s473_s12 = smov (!%p199_p4, %s399_s12), 6  ;;  %vm224_vm0 = vcmask 130048  }
   0xd   : > { %242 = vmatpush.msra.mxu0 %v219_v0  ;;  %s355_s20 = sshll.u32 %s473_s12, 3  ;;  %v384_v3 = vld [vmem:[%s466_s2] ss:$0 sm:$0xff] }
   0xe   : > { %s202_s23 = scalar_lea.vmem %s464_s0, %s355_s20  ;;  %s216_s28 = scalar_lea.vmem %s467_s3, %s355_s20 }
   0xf   : > { %243 = vmatpush.msra.mxu0 %v218_v1  ;;  %v217_v2 = vld [vmem:[%s202_s23] sm:$0xff] }
  0x10   : > { %357 = vmatmul.msk.f32.vlgmr.msra.gmra.mxu0 %vm224_vm0, %v217_v2 }
  0x8d   : > { %v245_v4 = vpop.f32.mrf.mxu0 }
  0x8e   : > { %v246_v5 = vadd.f32 %v384_v3, %v245_v4 }
  0x90   : > { %248 = vst [vmem:[%s216_s28] sm:$0xff] %v246_v5 }
  0x91 PF: > { %s13_s14 = sadd.s32 1, %s407_s14   ;;  %s468_s12 = smov %s403_s13 }
  0x92   : > { %p10_p5 = scmp.ge.s32.totalorder %s13_s14, 9   ;;  %s469_s13 = smov %s471_s15 }
  0x94   :  { %12 = sbr.rel (!%p10_p5) target bundleno = 2 (0x2), region = 68 }

// kernel: decoder_forward.8
= control target key start
LH: loop header
LB: loop body
LE: loop exit
PB: predicated region body
PF: predicated region fallthrough
CT: control target
= control target key end

     0   :  { %13 = vsyncpa [#allocation3], 0  ;;  %s868_s0 = inlined_call_operand.vmem [shape: f32[7,8,128], index: 0, kind: input, shape index: {}]   ;;  %s869_s1 = inlined_call_operand.vmem [shape: f32[8,128], index: 1, kind: input, shape index: {}]   ;;  %s870_s2 = inlined_call_operand.vmem [shape: f32[32,128], index: 2, kind: input, shape index: {}]   ;;  %s871_s3 = inlined_call_operand.vmem [shape: f32[8,32], index: 3, kind: input, shape index: {}]   ;;  %s872_s4 = inlined_call_operand.vmem [shape: f32[8,32], index: 4, kind: input, shape index: {}]   ;;  %s873_s5 = inlined_call_operand.vmem [shape: f32[7,8,32], index: 5, kind: output, shape index: {0}]   ;;  %s874_s6 = inlined_call_operand.hbm [shape: f32[8,32], index: 6, kind: output, shape index: {1}]   ;;  %s875_s7 = inlined_call_operand.hbm [shape: f32[8,32], index: 7, kind: output, shape index: {2}]  }
   0x1   :  { %v29_v0 = vld [vmem:[%s870_s2 + $0x18] sm:$0xff]  ;;  %v28_v1 = vld [vmem:[%s870_s2 + $0x10] sm:$0xff]  ;;  %v27_v2 = vld [vmem:[%s870_s2 + $0x8] sm:$0xff] }
   0x2   :  { %50 = vmatpush.msra.mxu0 %v29_v0  ;;  %122 = vmatpush.msra.mxu1 %v29_v0 }
   0x3   :  { %191 = vmatpush.msra.mxu2 %v29_v0  ;;  %260 = vmatpush.msra.mxu3 %v29_v0 }
   0x4   :  { %14 = vsyncpa [#allocation5], 0  ;;  %51 = vmatpush.msra.mxu0 %v28_v1  ;;  %123 = vmatpush.msra.mxu1 %v28_v1  ;;  %v26_v3 = vld [vmem:[%s870_s2] sm:$0xff]  ;;  %vm34_vm0 = vcmask 261120   ;;  %s700_s13 = smov 64   ;;  %s701_s16 = smov 32  }
   0x5   :  { %192 = vmatpush.msra.mxu2 %v28_v1  ;;  %261 = vmatpush.msra.mxu3 %v28_v1  ;;  %v30_v4 = vld [vmem:[%s871_s3] sm:$0xff]  ;;  %v563_v35 = vld [vmem:[%s868_s0 + $0x8] sm:$0xff]  ;;  %v567_v62 = vld [vmem:[%s868_s0 + $0x10] sm:$0xff]  ;;  %s703_s15 = smov [#allocation4]   ;;  %s545_s18 = sshll.u32 %s875_s7, 4  ;;  %s546_s18 = int_to_ptr.hbm [resolvable:$true] %s545_s18 }
   0x6   :  { %52 = vmatpush.msra.mxu0 %v27_v2  ;;  %124 = vmatpush.msra.mxu1 %v27_v2  ;;  %v764_v5 = vld [vmem:[%s869_s1] sm:$0xff]  ;;  %s543_s1 = sshll.u32 %s703_s15, 4  ;;  %s704_s19 = smov [#allocation2]   ;;  %s544_s1 = int_to_ptr.vmem [resolvable:$true] %s543_s1 }
   0x7   :  { %193 = vmatpush.msra.mxu2 %v27_v2  ;;  %262 = vmatpush.msra.mxu3 %v27_v2  ;;  %v32_v6 = vld [vmem:[%s868_s0] sm:$0xff]  ;;  %v107_v36 = vadd.f32 %v563_v35, %v764_v5  ;;  %v176_v63 = vadd.f32 %v567_v62, %v764_v5  ;;  %s532_s20 = sshll.u32 %s704_s19, 4  ;;  %s534_s22 = sshll.u32 %s874_s6, 4  ;;  %s533_s20 = int_to_ptr.vmem [resolvable:$true] %s532_s20  ;;  %s535_s22 = int_to_ptr.hbm [resolvable:$true] %s534_s22 }
   0x8   :  { %53 = vmatpush.msra.mxu0 %v26_v3  ;;  %125 = vmatpush.msra.mxu1 %v26_v3  ;;  %v33_v7 = vadd.f32 %v32_v6, %v764_v5  ;;  %v31_v11 = vld [vmem:[%s872_s4] sm:$0xff] }
   0x9   :  { %561 = vmatmul.msk.f32.vlgmr.msra.gmra.mxu0 %vm34_vm0, %v30_v4  ;;  %194 = vmatpush.msra.mxu2 %v26_v3 }
   0xa   :  { %263 = vmatpush.msra.mxu3 %v26_v3  ;;  %329 = vmatpush.msrb.mxu0 %v29_v0 }
   0xb   :  { %398 = vmatpush.msrb.mxu1 %v29_v0  ;;  %467 = vmatpush.msrb.mxu2 %v29_v0 }
   0xc   :  { %330 = vmatpush.msrb.mxu0 %v28_v1 }
   0xd   :  { %399 = vmatpush.msrb.mxu1 %v28_v1  ;;  %468 = vmatpush.msrb.mxu2 %v28_v1 }
   0xe   :  { %331 = vmatpush.msrb.mxu0 %v27_v2 }
   0xf   :  { %400 = vmatpush.msrb.mxu1 %v27_v2  ;;  %469 = vmatpush.msrb.mxu2 %v27_v2 }
  0x10   :  { %332 = vmatpush.msrb.mxu0 %v26_v3 }
  0x11   :  { %401 = vmatpush.msrb.mxu1 %v26_v3  ;;  %470 = vmatpush.msrb.mxu2 %v26_v3 }
  0x86   :  { %v55_v8 = vpop.f32.mrf.mxu0 }
  0x87   :  { %v58_v9 = vadd.f32 %v55_v8, %v33_v7 }
  0x89   :  { %592 = vtanh.f32 %v58_v9  ;;  %v562_v12 = vmul.f32 -1.442695, %v58_v9 }
  0x8b   :  { %594 = vpow2.f32 %v562_v12 }
  0x8f   :  { %v593_v10 = vpop.eup %592 }
  0x90   :  { %85 = vrot.lane.b32.xlu0 %v593_v10, %s700_s13 }
  0x91   :  { %v595_v13 = vpop.eup %594 }
  0x92   :  { %v62_v14 = vadd.f32 1.0, %v595_v13 }
  0x94   :  { %596 = vrcp.f32 %v62_v14  ;;  %v74_v20 = vand.u32 2147483648, %v62_v14  ;;  %vm68_vm2 = vweird.f32 %v62_v14  ;;  %v72_v21 = vand.u32 2147483647, %v62_v14 }
  0x96   :  { %v75_v23 = vor.u32 1.1754944e-38, %v74_v20  ;;  %vm73_vm4 = vcmp.eq.f32.partialorder %v72_v21, 8.507059e+37 }
  0x98   :  { %80 = vrot.lane.b32.xlu0 %v31_v11, %s701_s16 }
  0x9a   :  { %v597_v15 = vpop.eup %596 }
  0x9b   :  { %v64_v16 = vmul.f32 %v597_v15, %v62_v14  ;;  %vm69_vm1 = vweird.f32 %v597_v15 }
  0x9c   :  { %vm70_vm3 = vmor %vm68_vm2, %vm69_vm1 }
  0x9d   :  { %v65_v17 = vsub.f32 1.0, %v64_v16 }
  0x9f   :  { %v66_v18 = vmul.f32 %v597_v15, %v65_v17 }
  0xa1   :  { %v67_v19 = vadd.f32 %v597_v15, %v66_v18 }
  0xa3   :  { %v71_v22 = vsel %vm70_vm3, %v597_v15, %v67_v19 }
  0xa4   :  { %v76_v25 = vsel %vm73_vm4, %v75_v23, %v71_v22 }
 0x102   :  { %v86_v24 = vpop.permute.xlu0 %85 }
 0x103   :  { %v88_v26 = vmul.f32 %v86_v24, %v76_v25 }
 0x105   :  { %90 = vrot.lane.b32.xlu1 %v88_v26, %s701_s16  ;;  %v571_v26 = vld [vmem:[%s868_s0 + $0x18] sm:$0xff] }
 0x10a   :  { %v81_v27 = vpop.permute.xlu0 %80 }
 0x10b   :  { %v83_v28 = vmul.f32 %v81_v27, %v76_v25  ;;  %v245_v27 = vadd.f32 %v571_v26, %v764_v5 }
 0x177   :  { %v91_v29 = vpop.permute.xlu1 %90 }
 0x178   :  { %v93_v30 = vadd.f32 %v91_v29, %v83_v28 }
 0x17a   :  { %598 = vtanh.f32 %v93_v30 }
 0x180   :  { %v599_v31 = vpop.eup %598 }
 0x181   :  { %96 = vrot.lane.b32.xlu1 %v599_v31, %s700_s13 }
 0x1f3   :  { %v97_v32 = vpop.permute.xlu1 %96 }
 0x1f4   :  { %v99_v33 = vmul.f32 %v97_v32, %v76_v25 }
 0x1f6   :  { %101 = vrot.lane.b32.xlu2 %v99_v33, %s701_s16 }
 0x250   :  { %v102_v34 = vpop.permute.xlu2 %101 }
 0x251   :  { %104 = vst.msk [vmem:[%s873_s5] sm:$0xff] %vm34_vm0, %v102_v34  ;;  %564 = vmatmul.msk.f32.vlgmr.msra.gmra.mxu1 %vm34_vm0, %v102_v34 }
 0x2ce   :  { %v127_v37 = vpop.f32.mrf.mxu1 }
 0x2cf   :  { %v130_v38 = vadd.f32 %v127_v37, %v107_v36 }
 0x2d1   :  { %600 = vtanh.f32 %v130_v38  ;;  %v565_v40 = vmul.f32 -1.442695, %v130_v38 }
 0x2d3   :  { %602 = vpow2.f32 %v565_v40 }
 0x2d7   :  { %v601_v39 = vpop.eup %600 }
 0x2d8   :  { %153 = vrot.lane.b32.xlu2 %v601_v39, %s700_s13 }
 0x2d9   :  { %v603_v41 = vpop.eup %602 }
 0x2da   :  { %v134_v42 = vadd.f32 1.0, %v603_v41 }
 0x2dc   :  { %604 = vrcp.f32 %v134_v42  ;;  %v146_v48 = vand.u32 2147483648, %v134_v42  ;;  %vm140_vm6 = vweird.f32 %v134_v42  ;;  %v144_v49 = vand.u32 2147483647, %v134_v42 }
 0x2de   :  { %v147_v51 = vor.u32 1.1754944e-38, %v146_v48  ;;  %vm145_vm8 = vcmp.eq.f32.partialorder %v144_v49, 8.507059e+37 }
 0x2e2   :  { %v605_v43 = vpop.eup %604 }
 0x2e3   :  { %v136_v44 = vmul.f32 %v605_v43, %v134_v42  ;;  %vm141_vm5 = vweird.f32 %v605_v43 }
 0x2e4   :  { %vm142_vm7 = vmor %vm140_vm6, %vm141_vm5 }
 0x2e5   :  { %v137_v45 = vsub.f32 1.0, %v136_v44 }
 0x2e7   :  { %v138_v46 = vmul.f32 %v605_v43, %v137_v45 }
 0x2e9   :  { %v139_v47 = vadd.f32 %v605_v43, %v138_v46 }
 0x2eb   :  { %v143_v50 = vsel %vm142_vm7, %v605_v43, %v139_v47 }
 0x2ec   :  { %v148_v53 = vsel %vm145_vm8, %v147_v51, %v143_v50 }
 0x2ed   :  { %v151_v55 = vmul.f32 %v148_v53, %v93_v30 }
 0x332   :  { %v154_v52 = vpop.permute.xlu2 %153 }
 0x333   :  { %v156_v54 = vmul.f32 %v154_v52, %v148_v53 }
 0x335   :  { %158 = vrot.lane.b32.xlu0 %v156_v54, %s701_s16 }
 0x3a7   :  { %v159_v56 = vpop.permute.xlu0 %158 }
 0x3a8   :  { %v161_v57 = vadd.f32 %v159_v56, %v151_v55 }
 0x3aa   :  { %606 = vtanh.f32 %v161_v57 }
 0x3b0   :  { %v607_v58 = vpop.eup %606 }
 0x3b1   :  { %164 = vrot.lane.b32.xlu1 %v607_v58, %s700_s13 }
 0x423   :  { %v165_v59 = vpop.permute.xlu1 %164 }
 0x424   :  { %v167_v60 = vmul.f32 %v165_v59, %v148_v53  ;;  %v575_v53 = vld [vmem:[%s868_s0 + $0x20] sm:$0xff] }
 0x425   :  { %v314_v54 = vadd.f32 %v575_v53, %v764_v5 }
 0x426   :  { %169 = vrot.lane.b32.xlu2 %v167_v60, %s701_s16 }
 0x480   :  { %v170_v61 = vpop.permute.xlu2 %169 }
 0x481   :  { %566 = vst.msk [vmem:[%s873_s5 + $0x8] sm:$0xff] %vm34_vm0, %v170_v61  ;;  %568 = vmatmul.msk.f32.vlgmr.msra.gmra.mxu2 %vm34_vm0, %v170_v61 }
 0x504   :  { %v196_v0 = vpop.f32.mrf.mxu2 }
 0x505   :  { %v199_v1 = vadd.f32 %v196_v0, %v176_v63 }
 0x507   :  { %608 = vtanh.f32 %v199_v1  ;;  %v569_v3 = vmul.f32 -1.442695, %v199_v1 }
 0x509   :  { %610 = vpow2.f32 %v569_v3 }
 0x50d   :  { %v609_v2 = vpop.eup %608 }
 0x50e   :  { %222 = vrot.lane.b32.xlu0 %v609_v2, %s700_s13 }
 0x50f   :  { %v611_v4 = vpop.eup %610 }
 0x510   :  { %v203_v6 = vadd.f32 1.0, %v611_v4 }
 0x512   :  { %612 = vrcp.f32 %v203_v6  ;;  %v215_v12 = vand.u32 2147483648, %v203_v6  ;;  %vm209_vm10 = vweird.f32 %v203_v6  ;;  %v213_v13 = vand.u32 2147483647, %v203_v6 }
 0x514   :  { %v216_v15 = vor.u32 1.1754944e-38, %v215_v12  ;;  %vm214_vm12 = vcmp.eq.f32.partialorder %v213_v13, 8.507059e+37 }
 0x518   :  { %v613_v7 = vpop.eup %612 }
 0x519   :  { %v205_v8 = vmul.f32 %v613_v7, %v203_v6  ;;  %vm210_vm9 = vweird.f32 %v613_v7 }
 0x51a   :  { %vm211_vm11 = vmor %vm209_vm10, %vm210_vm9 }
 0x51b   :  { %v206_v9 = vsub.f32 1.0, %v205_v8 }
 0x51d   :  { %v207_v10 = vmul.f32 %v613_v7, %v206_v9 }
 0x51f   :  { %v208_v11 = vadd.f32 %v613_v7, %v207_v10 }
 0x521   :  { %v212_v14 = vsel %vm211_vm11, %v613_v7, %v208_v11 }
 0x522   :  { %v217_v17 = vsel %vm214_vm12, %v216_v15, %v212_v14 }
 0x523   :  { %v220_v19 = vmul.f32 %v217_v17, %v161_v57 }
 0x580   :  { %v223_v16 = vpop.permute.xlu0 %222 }
 0x581   :  { %v225_v18 = vmul.f32 %v223_v16, %v217_v17 }
 0x583   :  { %227 = vrot.lane.b32.xlu1 %v225_v18, %s701_s16 }
 0x5f5   :  { %v228_v20 = vpop.permute.xlu1 %227 }
 0x5f6   :  { %v230_v21 = vadd.f32 %v228_v20, %v220_v19 }
 0x5f8   :  { %614 = vtanh.f32 %v230_v21 }
 0x5fe   :  { %v615_v22 = vpop.eup %614 }
 0x5ff   :  { %233 = vrot.lane.b32.xlu2 %v615_v22, %s700_s13 }
 0x659   :  { %v234_v23 = vpop.permute.xlu2 %233 }
 0x65a   :  { %v236_v24 = vmul.f32 %v234_v23, %v217_v17  ;;  %v579_v17 = vld [vmem:[%s868_s0 + $0x28] sm:$0xff] }
 0x65b   :  { %v383_v18 = vadd.f32 %v579_v17, %v764_v5 }
 0x65c   :  { %238 = vrot.lane.b32.xlu0 %v236_v24, %s701_s16 }
 0x6ce   :  { %v239_v25 = vpop.permute.xlu0 %238 }
 0x6cf   :  { %570 = vst.msk [vmem:[%s873_s5 + $0x10] sm:$0xff] %vm34_vm0, %v239_v25  ;;  %572 = vmatmul.msk.f32.vlgmr.msra.gmra.mxu3 %vm34_vm0, %v239_v25 }
 0x752   :  { %v265_v28 = vpop.f32.mrf.mxu3 }
 0x753   :  { %v268_v29 = vadd.f32 %v265_v28, %v245_v27 }
 0x755   :  { %616 = vtanh.f32 %v268_v29  ;;  %v573_v31 = vmul.f32 -1.442695, %v268_v29 }
 0x757   :  { %618 = vpow2.f32 %v573_v31 }
 0x75b   :  { %v617_v30 = vpop.eup %616 }
 0x75c   :  { %291 = vrot.lane.b32.xlu1 %v617_v30, %s700_s13 }
 0x75d   :  { %v619_v32 = vpop.eup %618 }
 0x75e   :  { %v272_v33 = vadd.f32 1.0, %v619_v32 }
 0x760   :  { %620 = vrcp.f32 %v272_v33  ;;  %v284_v39 = vand.u32 2147483648, %v272_v33  ;;  %vm278_vm14 = vweird.f32 %v272_v33  ;;  %v282_v40 = vand.u32 2147483647, %v272_v33 }
 0x762   :  { %v285_v42 = vor.u32 1.1754944e-38, %v284_v39  ;;  %vm283_vm1 = vcmp.eq.f32.partialorder %v282_v40, 8.507059e+37 }
 0x766   :  { %v621_v34 = vpop.eup %620 }
 0x767   :  { %v274_v35 = vmul.f32 %v621_v34, %v272_v33  ;;  %vm279_vm13 = vweird.f32 %v621_v34 }
 0x768   :  { %vm280_vm15 = vmor %vm278_vm14, %vm279_vm13 }
 0x769   :  { %v275_v36 = vsub.f32 1.0, %v274_v35 }
 0x76b   :  { %v276_v37 = vmul.f32 %v621_v34, %v275_v36 }
 0x76d   :  { %v277_v38 = vadd.f32 %v621_v34, %v276_v37 }
 0x76f   :  { %v281_v41 = vsel %vm280_vm15, %v621_v34, %v277_v38 }
 0x770   :  { %v286_v44 = vsel %vm283_vm1, %v285_v42, %v281_v41 }
 0x771   :  { %v289_v46 = vmul.f32 %v286_v44, %v230_v21 }
 0x7ce   :  { %v292_v43 = vpop.permute.xlu1 %291 }
 0x7cf   :  { %v294_v45 = vmul.f32 %v292_v43, %v286_v44 }
 0x7d1   :  { %296 = vrot.lane.b32.xlu2 %v294_v45, %s701_s16 }
 0x82b   :  { %v297_v47 = vpop.permute.xlu2 %296 }
 0x82c   :  { %v299_v48 = vadd.f32 %v297_v47, %v289_v46 }
 0x82e   :  { %622 = vtanh.f32 %v299_v48 }
 0x834   :  { %v623_v49 = vpop.eup %622 }
 0x835   :  { %302 = vrot.lane.b32.xlu0 %v623_v49, %s700_s13 }
 0x8a7   :  { %v303_v50 = vpop.permute.xlu0 %302 }
 0x8a8   :  { %v305_v51 = vmul.f32 %v303_v50, %v286_v44  ;;  %v583_v44 = vld [vmem:[%s868_s0 + $0x30] sm:$0xff]  ;;  %s702_s0 = smov 96  }
 0x8a9   :  { %v452_v45 = vadd.f32 %v583_v44, %v764_v5 }
 0x8aa   :  { %307 = vrot.lane.b32.xlu1 %v305_v51, %s701_s16 }
 0x91c   :  { %v308_v52 = vpop.permute.xlu1 %307 }
 0x91d   :  { %574 = vst.msk [vmem:[%s873_s5 + $0x18] sm:$0xff] %vm34_vm0, %v308_v52  ;;  %576 = vmatmul.msk.f32.vlgmr.msrb.gmra.mxu0 %vm34_vm0, %v308_v52 }
 0x99a   :  { %v334_v55 = vpop.f32.mrf.mxu0 }
 0x99b   :  { %v337_v56 = vadd.f32 %v334_v55, %v314_v54 }
 0x99d   :  { %624 = vtanh.f32 %v337_v56  ;;  %v577_v58 = vmul.f32 -1.442695, %v337_v56 }
 0x99f   :  { %626 = vpow2.f32 %v577_v58 }
 0x9a3   :  { %v625_v57 = vpop.eup %624 }
 0x9a4   :  { %360 = vrot.lane.b32.xlu2 %v625_v57, %s700_s13 }
 0x9a5   :  { %v627_v59 = vpop.eup %626 }
 0x9a6   :  { %v341_v60 = vadd.f32 1.0, %v627_v59 }
 0x9a8   :  { %628 = vrcp.f32 %v341_v60  ;;  %v353_v2 = vand.u32 2147483648, %v341_v60  ;;  %vm347_vm3 = vweird.f32 %v341_v60  ;;  %v351_v3 = vand.u32 2147483647, %v341_v60 }
 0x9aa   :  { %v354_v6 = vor.u32 1.1754944e-38, %v353_v2  ;;  %vm352_vm5 = vcmp.eq.f32.partialorder %v351_v3, 8.507059e+37 }
 0x9ae   :  { %v629_v61 = vpop.eup %628 }
 0x9af   :  { %v343_v62 = vmul.f32 %v629_v61, %v341_v60  ;;  %vm348_vm2 = vweird.f32 %v629_v61 }
 0x9b0   :  { %vm349_vm4 = vmor %vm347_vm3, %vm348_vm2 }
 0x9b1   :  { %v344_v63 = vsub.f32 1.0, %v343_v62 }
 0x9b3   :  { %v345_v0 = vmul.f32 %v629_v61, %v344_v63 }
 0x9b5   :  { %v346_v1 = vadd.f32 %v629_v61, %v345_v0 }
 0x9b7   :  { %v350_v4 = vsel %vm349_vm4, %v629_v61, %v346_v1 }
 0x9b8   :  { %v355_v8 = vsel %vm352_vm5, %v354_v6, %v350_v4 }
 0x9b9   :  { %v358_v10 = vmul.f32 %v355_v8, %v299_v48 }
 0x9fe   :  { %v361_v7 = vpop.permute.xlu2 %360 }
 0x9ff   :  { %v363_v9 = vmul.f32 %v361_v7, %v355_v8 }
 0xa01   :  { %365 = vrot.lane.b32.xlu0 %v363_v9, %s701_s16 }
 0xa73   :  { %v366_v11 = vpop.permute.xlu0 %365 }
 0xa74   :  { %v368_v12 = vadd.f32 %v366_v11, %v358_v10 }
 0xa76   :  { %630 = vtanh.f32 %v368_v12 }
 0xa7c   :  { %v631_v13 = vpop.eup %630 }
 0xa7d   :  { %371 = vrot.lane.b32.xlu1 %v631_v13, %s700_s13 }
 0xaef   :  { %v372_v14 = vpop.permute.xlu1 %371 }
 0xaf0   :  { %v374_v15 = vmul.f32 %v372_v14, %v355_v8 }
 0xaf2   :  { %376 = vrot.lane.b32.xlu2 %v374_v15, %s701_s16 }
 0xb4c   :  { %v377_v16 = vpop.permute.xlu2 %376 }
 0xb4d   :  { %578 = vst.msk [vmem:[%s873_s5 + $0x20] sm:$0xff] %vm34_vm0, %v377_v16  ;;  %580 = vmatmul.msk.f32.vlgmr.msrb.gmra.mxu1 %vm34_vm0, %v377_v16 }
 0xbca   :  { %v403_v19 = vpop.f32.mrf.mxu1 }
 0xbcb   :  { %v406_v20 = vadd.f32 %v403_v19, %v383_v18 }
 0xbcd   :  { %632 = vtanh.f32 %v406_v20  ;;  %v581_v22 = vmul.f32 -1.442695, %v406_v20 }
 0xbcf   :  { %634 = vpow2.f32 %v581_v22 }
 0xbd3   :  { %v633_v21 = vpop.eup %632 }
 0xbd4   :  { %429 = vrot.lane.b32.xlu0 %v633_v21, %s700_s13 }
 0xbd5   :  { %v635_v23 = vpop.eup %634 }
 0xbd6   :  { %v410_v24 = vadd.f32 1.0, %v635_v23 }
 0xbd8   :  { %636 = vrcp.f32 %v410_v24  ;;  %v422_v30 = vand.u32 2147483648, %v410_v24  ;;  %vm416_vm7 = vweird.f32 %v410_v24  ;;  %v420_v31 = vand.u32 2147483647, %v410_v24 }
 0xbda   :  { %v423_v33 = vor.u32 1.1754944e-38, %v422_v30  ;;  %vm421_vm9 = vcmp.eq.f32.partialorder %v420_v31, 8.507059e+37 }
 0xbde   :  { %v637_v25 = vpop.eup %636 }
 0xbdf   :  { %v412_v26 = vmul.f32 %v637_v25, %v410_v24  ;;  %vm417_vm6 = vweird.f32 %v637_v25 }
 0xbe0   :  { %vm418_vm8 = vmor %vm416_vm7, %vm417_vm6 }
 0xbe1   :  { %v413_v27 = vsub.f32 1.0, %v412_v26 }
 0xbe3   :  { %v414_v28 = vmul.f32 %v637_v25, %v413_v27 }
 0xbe5   :  { %v415_v29 = vadd.f32 %v637_v25, %v414_v28 }
 0xbe7   :  { %v419_v32 = vsel %vm418_vm8, %v637_v25, %v415_v29 }
 0xbe8   :  { %v424_v35 = vsel %vm421_vm9, %v423_v33, %v419_v32 }
 0xbe9   :  { %v427_v37 = vmul.f32 %v424_v35, %v368_v12 }
 0xc46   :  { %v430_v34 = vpop.permute.xlu0 %429 }
 0xc47   :  { %v432_v36 = vmul.f32 %v430_v34, %v424_v35 }
 0xc49   :  { %434 = vrot.lane.b32.xlu1 %v432_v36, %s701_s16 }
 0xcbb   :  { %v435_v38 = vpop.permute.xlu1 %434 }
 0xcbc   :  { %v437_v39 = vadd.f32 %v435_v38, %v427_v37 }
 0xcbe   :  { %638 = vtanh.f32 %v437_v39 }
 0xcc4   :  { %v639_v40 = vpop.eup %638 }
 0xcc5   :  { %440 = vrot.lane.b32.xlu2 %v639_v40, %s700_s13 }
 0xd1f   :  { %v441_v41 = vpop.permute.xlu2 %440 }
 0xd20   :  { %v443_v42 = vmul.f32 %v441_v41, %v424_v35 }
 0xd22   :  { %445 = vrot.lane.b32.xlu0 %v443_v42, %s701_s16 }
 0xd94   :  { %v446_v43 = vpop.permute.xlu0 %445 }
 0xd95   :  { %582 = vst.msk [vmem:[%s873_s5 + $0x28] sm:$0xff] %vm34_vm0, %v446_v43  ;;  %584 = vmatmul.msk.f32.vlgmr.msrb.gmra.mxu2 %vm34_vm0, %v446_v43 }
 0xe18   :  { %v472_v46 = vpop.f32.mrf.mxu2 }
 0xe19   :  { %v475_v47 = vadd.f32 %v472_v46, %v452_v45 }
 0xe1b   :  { %640 = vtanh.f32 %v475_v47  ;;  %v585_v49 = vmul.f32 -1.442695, %v475_v47 }
 0xe1d   :  { %642 = vpow2.f32 %v585_v49 }
 0xe21   :  { %v641_v48 = vpop.eup %640 }
 0xe22   :  { %498 = vrot.lane.b32.xlu1 %v641_v48, %s700_s13 }
 0xe23   :  { %v643_v50 = vpop.eup %642 }
 0xe24   :  { %v479_v51 = vadd.f32 1.0, %v643_v50 }
 0xe26   :  { %644 = vrcp.f32 %v479_v51  ;;  %v491_v57 = vand.u32 2147483648, %v479_v51  ;;  %vm485_vm11 = vweird.f32 %v479_v51  ;;  %v489_v5 = vand.u32 2147483647, %v479_v51 }
 0xe28   :  { %v492_v59 = vor.u32 1.1754944e-38, %v491_v57  ;;  %vm490_vm13 = vcmp.eq.f32.partialorder %v489_v5, 8.507059e+37 }
 0xe2c   :  { %v645_v52 = vpop.eup %644 }
 0xe2d   :  { %v481_v53 = vmul.f32 %v645_v52, %v479_v51  ;;  %vm486_vm10 = vweird.f32 %v645_v52 }
 0xe2e   :  { %vm487_vm12 = vmor %vm485_vm11, %vm486_vm10 }
 0xe2f   :  { %v482_v54 = vsub.f32 1.0, %v481_v53 }
 0xe31   :  { %v483_v55 = vmul.f32 %v645_v52, %v482_v54 }
 0xe33   :  { %v484_v56 = vadd.f32 %v645_v52, %v483_v55 }
 0xe35   :  { %v488_v58 = vsel %vm487_vm12, %v645_v52, %v484_v56 }
 0xe36   :  { %v493_v61 = vsel %vm490_vm13, %v492_v59, %v488_v58 }
 0xe37   :  { %v496_v63 = vmul.f32 %v493_v61, %v437_v39 }
 0xe94   :  { %v499_v60 = vpop.permute.xlu1 %498 }
 0xe95   :  { %v501_v62 = vmul.f32 %v499_v60, %v493_v61 }
 0xe97   :  { %503 = vrot.lane.b32.xlu2 %v501_v62, %s701_s16 }
 0xef1   :  { %v504_v0 = vpop.permute.xlu2 %503 }
 0xef2   :  { %v506_v1 = vadd.f32 %v504_v0, %v496_v63 }
 0xef4   :  { %646 = vtanh.f32 %v506_v1  ;;  %521 = vrot.lane.b32.xlu2 %v506_v1, %s702_s0 }
 0xefa   :  { %v647_v2 = vpop.eup %646 }
 0xefb   :  { %509 = vrot.lane.b32.xlu0 %v647_v2, %s700_s13 }
 0xf4e   :  { %v522_v3 = vpop.permute.xlu2 %521 }
 0xf4f   :  { %524 = vst.msk [vmem:[#allocation4] sm:$0xff] %vm34_vm0, %v522_v3 }
 0xf50   :  { %548 = dma.vmem_to_hbm [thread:$0]  %s544_s1, 128, %s546_s18, [#allocation5]  }
 0xf6d   :  { %v510_v4 = vpop.permute.xlu0 %509 }
 0xf6e   :  { %v512_v6 = vmul.f32 %v510_v4, %v493_v61 }
 0xf70   :  { %514 = vrot.lane.b32.xlu1 %v512_v6, %s701_s16 }
 0xfe2   :  { %v515_v7 = vpop.permute.xlu1 %514 }
 0xfe3   :  { %586 = vst.msk [vmem:[%s873_s5 + $0x30] sm:$0xff] %vm34_vm0, %v515_v7 }
 0xfe4   :  { %519 = vst.msk [vmem:[#allocation2] sm:$0xff] %vm34_vm0, %v515_v7 }
 0xfe5   :  { %537 = dma.vmem_to_hbm [thread:$0]  %s533_s20, 128, %s535_s22, [#allocation3]  }
 0xfe6   :  { %696 = dma.done.wait [#allocation3], 128  }
 0xfe7   :  { %697 = vsyncadd [#allocation3], 4294967168 }
 0xfe8   :  { %698 = dma.done.wait [#allocation5], 128  }
 0xfe9   :  { %699 = vsyncadd [#allocation5], 4294967168 }
 0xfea   :  { %559 = vsyncpa [#allocation3], 1 }
 0xfeb   :  { %560 = vsyncpa [#allocation5], 1 }

</bundles_post_ra>
